<compile_context>
chip_gen: v7x
topology: tpu7x:2x2x1
jax: 0.10.0
libtpu: 0.0.40
codegen_flags: <defaults>
</compile_context>

<pallas_src>
import math

import jax
import jax.numpy as jnp
from jax.experimental import pallas as pl
from jax.experimental.pallas import tpu as pltpu


def _round_up(n, m):
    return ((n + m - 1) // m) * m


def _layernorm_2pass(x, gamma, beta, eps=1e-5):
    """Numerically safe two-pass LayerNorm (used on raw, un-normalized x)."""
    mu = jnp.mean(x, axis=-1, keepdims=True)
    var = jnp.mean((x - mu) ** 2, axis=-1, keepdims=True)
    return (x - mu) * jax.lax.rsqrt(var + eps) * gamma + beta


def _layernorm_1pass(x, gamma, beta, eps=1e-5):
    """One-pass LayerNorm: sum(x) and sum(x*x) in a single sweep.

    Only used on standardized-scale inputs (post-GELU / post-projection).
    """
    mu = jnp.mean(x, axis=-1, keepdims=True)
    ms = jnp.mean(x * x, axis=-1, keepdims=True)
    var = jnp.maximum(ms - mu * mu, 0.0)
    return (x - mu) * jax.lax.rsqrt(var + eps) * gamma + beta


# Row layout of the packed (16, H) vector buffer.
_ROW_B_FP, _ROW_G_FP, _ROW_BN_FP = 0, 1, 2
_ROW_B_SP, _ROW_G_SP, _ROW_BN_SP = 3, 4, 5
_ROW_B_ATT, _ROW_G_OUT, _ROW_B_OUT = 6, 7, 8
_VEC_ROWS = 16  # padded to a multiple of 8 sublanes


def shap_attention_kernel(
    x_ref, shap_ref,          # (tm, Din) / (tm, Dsh) bf16 activation tiles
    w_fp_ref,                 # (Din, H)  feature_proj weight (input_norm affine folded)
    w_sp_ref,                 # (Dsh, H)  shap_proj weight
    w_att_ref,                # (H, H)    folded MHA v-proj @ out-proj
    vec_ref,                  # (16, H)   packed f32 bias / gamma / beta rows
    scale_ref,                # (1, 1)    shap_scale in SMEM
    out_ref,
):
    x = x_ref[...].astype(jnp.float32)
    shap = shap_ref[...].astype(jnp.float32)

    row = lambda k: vec_ref[k:k + 1, :]  # (1, H) f32, static slice
    b_fp, g_fp, bn_fp = row(_ROW_B_FP), row(_ROW_G_FP), row(_ROW_BN_FP)
    b_sp, g_sp, bn_sp = row(_ROW_B_SP), row(_ROW_G_SP), row(_ROW_BN_SP)
    b_att, g_out, b_out = row(_ROW_B_ATT), row(_ROW_G_OUT), row(_ROW_B_OUT)

    # ---- input_norm (affine folded into w_fp/b_fp -> plain standardization).
    # Two-pass stats: raw x has unknown dynamic range.
    mu = jnp.mean(x, axis=-1, keepdims=True)
    var = jnp.mean((x - mu) ** 2, axis=-1, keepdims=True)
    xn = (x - mu) * jax.lax.rsqrt(var + 1e-5)

    # ---- feature_proj: Linear -> GELU -> LayerNorm ----
    h = jnp.dot(xn.astype(w_fp_ref.dtype), w_fp_ref[...],
                preferred_element_type=jnp.float32) + b_fp
    h = jax.nn.gelu(h, approximate=True)   # tanh form -> EUP; ~1e-3 off erf form
    x_proj = _layernorm_1pass(h, g_fp, bn_fp)

    # ---- shap_proj: Linear -> LayerNorm -> Dropout(eval: identity) ----
    s = jnp.dot(shap.astype(w_sp_ref.dtype), w_sp_ref[...],
                preferred_element_type=jnp.float32) + b_sp
    shap_proj = _layernorm_1pass(s, g_sp, bn_sp)

    # ---- gating ----
    shap_scale = scale_ref[0, 0]
    x_comb = x_proj * (1.0 + shap_scale * jax.nn.sigmoid(shap_proj))

    # ---- MultiheadAttention, seq_len == 1 -> out_proj(v_proj(x)) == one matmul
    attn_out = jnp.dot(x_comb.astype(w_att_ref.dtype), w_att_ref[...],
                       preferred_element_type=jnp.float32) + b_att

    # ---- residual + final LayerNorm ----
    out = _layernorm_1pass(attn_out + x_proj, g_out, b_out)
    out_ref[...] = out.astype(out_ref.dtype)


def _prepare_params(params, matmul_dtype):
    """Fold input_norm affine into feature_proj, fold v-proj@out-proj, pack vectors."""
    w_fp = params["w_fp"]
    w_fp_folded = params["g_in"][:, None] * w_fp
    b_fp_folded = params["b_fp"] + params["b_in"] @ w_fp
    w_att = params["w_v"] @ params["w_o"]
    b_att = params["b_v"] @ params["w_o"] + params["b_o"]

    H = w_fp.shape[1]
    rows = [b_fp_folded, params["g_fp"], params["bn_fp"],
            params["b_sp"], params["g_sp"], params["bn_sp"],
            b_att, params["g_out"], params["b_out"]]
    vecs = jnp.zeros((_VEC_ROWS, H), jnp.float32)
    vecs = vecs.at[:len(rows)].set(
        jnp.stack([r.astype(jnp.float32) for r in rows], axis=0))

    return dict(
        w_fp=w_fp_folded.astype(matmul_dtype),
        w_sp=params["w_sp"].astype(matmul_dtype),
        w_att=w_att.astype(matmul_dtype),
        vecs=vecs,
        shap_scale=params["shap_scale"].reshape(1, 1).astype(jnp.float32),
    )


def _const_spec(shape, single_buffer):
    """BlockSpec for a block that never changes across the grid (weights)."""
    idx = lambda i: (0, 0)
    if single_buffer and hasattr(pl, "Buffered"):
        try:
            # Constant index_map -> double-buffering is pure VMEM waste.
            return pl.BlockSpec(shape, idx, pipeline_mode=pl.Buffered(1))
        except TypeError:
            pass
    return pl.BlockSpec(shape, idx)


def shap_attention_forward(x, shap_weights, params, *, tm=512,
                           matmul_dtype=jnp.bfloat16, out_dtype=None):
    """Returns (output, attn_weights), mirroring SHAPAttention.forward (eval mode)."""
    # Glue (matches `if len(shap_weights.shape) > 2: shap_weights = shap_weights.mean(dim=0)`)
    if shap_weights.ndim > 2:
        shap_weights = jnp.mean(shap_weights, axis=0)

    B, Din = x.shape
    Dsh = shap_weights.shape[-1]
    H = params["w_fp"].shape[1]
    out_dtype = x.dtype if out_dtype is None else out_dtype

    p = _prepare_params(params, matmul_dtype)

    # bf16 inputs in HBM: halves input DMA bytes; kernel upcasts to f32 for LN math.
    x_in = x.astype(matmul_dtype)
    shap_in = shap_weights.astype(matmul_dtype)
    in_bytes = jnp.dtype(matmul_dtype).itemsize
    out_bytes = jnp.dtype(out_dtype).itemsize

    # ---- Tile-size selection (VMEM-budgeted; sized for v7x 64 MiB / v5e defaults).
    per_row = (2 * (Din + Dsh) * in_bytes      # double-buffered activation tiles
               + 2 * H * out_bytes             # double-buffered output tile
               + (2 * Din + 6 * H) * 4)        # f32 in-kernel temporaries headroom
    weight_bytes = (Din * H + Dsh * H + H * H) * in_bytes + _VEC_ROWS * H * 4
    budget = 24 << 20                          # conservative across v5e/v6e/v7x
    tm_cap = max(8, ((budget - weight_bytes) // per_row) // 8 * 8)
    tm_eff = max(8, min(tm, tm_cap))

    # Even batch split: caps padding waste at <8 rows/tile, and keeps >= 2 grid
    # steps when possible so both v7x TensorCores get work.
    min_tiles = 2 if B >= 16 else 1
    n_tiles = max(pl.cdiv(B, tm_eff), min_tiles)
    tm_eff = _round_up(pl.cdiv(B, n_tiles), 8)
    n_tiles = pl.cdiv(B, tm_eff)
    Bp = n_tiles * tm_eff
    if Bp != B:
        x_in = jnp.pad(x_in, ((0, Bp - B), (0, 0)))
        shap_in = jnp.pad(shap_in, ((0, Bp - B), (0, 0)))

    vmem_est = per_row * tm_eff + weight_bytes
    vmem_limit = int(min(max(2 * vmem_est, 32 << 20), 60 << 20))

    def _run(single_buffer_weights):
        in_specs = [
            pl.BlockSpec((tm_eff, Din), lambda i: (i, 0)),       # x tile
            pl.BlockSpec((tm_eff, Dsh), lambda i: (i, 0)),       # shap tile
            _const_spec((Din, H), single_buffer_weights),        # w_fp
            _const_spec((Dsh, H), single_buffer_weights),        # w_sp
            _const_spec((H, H), single_buffer_weights),          # w_att (folded)
            _const_spec((_VEC_ROWS, H), single_buffer_weights),  # packed vectors
            pl.BlockSpec(memory_space=pltpu.MemorySpace.SMEM),   # shap_scale scalar
        ]
        return pl.pallas_call(
            shap_attention_kernel,
            out_shape=jax.ShapeDtypeStruct((Bp, H), out_dtype),
            grid_spec=pl.GridSpec(
                grid=(n_tiles,),
                in_specs=in_specs,
                out_specs=pl.BlockSpec((tm_eff, H), lambda i: (i, 0)),
            ),
            compiler_params=pltpu.CompilerParams(
                dimension_semantics=("parallel",),
                vmem_limit_bytes=vmem_limit,
            ),
        )(x_in, shap_in, p["w_fp"], p["w_sp"], p["w_att"], p["vecs"],
          p["shap_scale"])

    try:
        out = _run(True)
    except Exception:
        # Fallback if pipeline_mode=pl.Buffered(1) is unsupported on this build;
        # identical semantics, just default double-buffered weight blocks.
        out = _run(False)

    out = out[:B]
    # softmax over a length-1 sequence is exactly 1.0 -> attn_weights is ones (B, 1, 1).
    attn_weights = jnp.ones((B, 1, 1), dtype=out_dtype)
    return out, attn_weights


def shap_attention_reference(x, shap_weights, params):
    """Pure-JAX f32 reference (unfolded, erf GELU) mirroring the PyTorch module."""
    if shap_weights.ndim > 2:
        shap_weights = jnp.mean(shap_weights, axis=0)
    xn = _layernorm_2pass(x, params["g_in"], params["b_in"])
    h = xn @ params["w_fp"] + params["b_fp"]
    h = jax.nn.gelu(h, approximate=False)
    x_proj = _layernorm_2pass(h, params["g_fp"], params["bn_fp"])
    s = shap_weights @ params["w_sp"] + params["b_sp"]
    shap_proj = _layernorm_2pass(s, params["g_sp"], params["bn_sp"])
    x_comb = x_proj * (1.0 + params["shap_scale"][0] * jax.nn.sigmoid(shap_proj))
    v = x_comb @ params["w_v"] + params["b_v"]
    attn = v @ params["w_o"] + params["b_o"]
    return _layernorm_2pass(attn + x_proj, params["g_out"], params["b_out"])


def init_params(key, input_dim, shap_dim, hidden_dim):
    """Deterministic synthetic init (xavier-normal Linears, zero biases, unit LN)."""
    def xavier(k, fan_in, fan_out):
        std = math.sqrt(2.0 / (fan_in + fan_out))
        return std * jax.random.normal(k, (fan_in, fan_out), dtype=jnp.float32)

    ks = jax.random.split(key, 4)
    return {
        # input_norm
        "g_in": jnp.ones((input_dim,), jnp.float32),
        "b_in": jnp.zeros((input_dim,), jnp.float32),
        # feature_proj: Linear(input_dim, hidden) + GELU + LayerNorm(hidden)
        "w_fp": xavier(ks[0], input_dim, hidden_dim),
        "b_fp": jnp.zeros((hidden_dim,), jnp.float32),
        "g_fp": jnp.ones((hidden_dim,), jnp.float32),
        "bn_fp": jnp.zeros((hidden_dim,), jnp.float32),
        # shap_proj: Linear(shap_dim, hidden) + LayerNorm(hidden) + Dropout
        "w_sp": xavier(ks[1], shap_dim, hidden_dim),
        "b_sp": jnp.zeros((hidden_dim,), jnp.float32),
        "g_sp": jnp.ones((hidden_dim,), jnp.float32),
        "bn_sp": jnp.zeros((hidden_dim,), jnp.float32),
        # shap_scale
        "shap_scale": jnp.ones((1,), jnp.float32),
        # MHA value-projection slice of in_proj_weight, and out_proj
        "w_v": xavier(ks[2], hidden_dim, hidden_dim),
        "b_v": jnp.zeros((hidden_dim,), jnp.float32),
        "w_o": xavier(ks[3], hidden_dim, hidden_dim),
        "b_o": jnp.zeros((hidden_dim,), jnp.float32),
        # final layer_norm
        "g_out": jnp.ones((hidden_dim,), jnp.float32),
        "b_out": jnp.zeros((hidden_dim,), jnp.float32),
    }


if __name__ == "__main__":
    # Small shapes consistent with the module; B=20 exercises both the padding
    # path and a 2-step grid (megacore split).
    B, INPUT_DIM, SHAP_DIM, HIDDEN_DIM = 20, 256, 256, 128

    key = jax.random.PRNGKey(0)
    k_x, k_s, k_p = jax.random.split(key, 3)

    x = jax.random.normal(k_x, (B, INPUT_DIM), dtype=jnp.float32)
    shap_weights = jax.random.normal(k_s, (B, SHAP_DIM), dtype=jnp.float32)
    params = init_params(k_p, INPUT_DIM, SHAP_DIM, HIDDEN_DIM)

    output, attn_weights = shap_attention_forward(x, shap_weights, params)
    output = jax.block_until_ready(output)
    attn_weights = jax.block_until_ready(attn_weights)

    assert output.shape == (B, HIDDEN_DIM)
    assert attn_weights.shape == (B, 1, 1)
    assert bool(jnp.all(jnp.isfinite(output)))

    # Sanity check vs. unfolded f32 reference (loose tol: bf16 inputs/weights + tanh GELU).
    ref = shap_attention_reference(x, shap_weights, params)
    assert float(jnp.max(jnp.abs(output - ref))) < 0.2

    print("KERNEL_OK")
</pallas_src>

<mosaic_0001>
module attributes {stable_mosaic.version = 11 : i64} {
  func.func @shap_attention_kernel(%arg0: i32, %arg1: memref<16x256xbf16, #tpu.memory_space<vmem>>, %arg2: memref<16x256xbf16, #tpu.memory_space<vmem>>, %arg3: memref<256x128xbf16, #tpu.memory_space<vmem>>, %arg4: memref<256x128xbf16, #tpu.memory_space<vmem>>, %arg5: memref<128x128xbf16, #tpu.memory_space<vmem>>, %arg6: memref<16x128xf32, #tpu.memory_space<vmem>>, %arg7: memref<1x1xf32, #tpu.memory_space<smem>>, %arg8: memref<16x128xf32, #tpu.memory_space<vmem>>) attributes {dimension_semantics = [#tpu.dimension_semantics<parallel>], iteration_bounds = array<i64: 2>, scalar_prefetch = 0 : i64, scratch_operands = 0 : i64, tpu.core_type = #tpu.core_type<tc>, window_params = [{transform_indices = @transform_0, window_bounds = array<i64: 16, 256>}, {transform_indices = @transform_1, window_bounds = array<i64: 16, 256>}, {pipeline_mode = #tpu.pipeline_mode<synchronous>, transform_indices = @transform_2, window_bounds = array<i64: 256, 128>}, {pipeline_mode = #tpu.pipeline_mode<synchronous>, transform_indices = @transform_3, window_bounds = array<i64: 256, 128>}, {pipeline_mode = #tpu.pipeline_mode<synchronous>, transform_indices = @transform_4, window_bounds = array<i64: 128, 128>}, {pipeline_mode = #tpu.pipeline_mode<synchronous>, transform_indices = @transform_5, window_bounds = array<i64: 16, 128>}, {transform_indices = @transform_6, window_bounds = array<i64: 1, 1>}, {transform_indices = @transform_7, window_bounds = array<i64: 16, 128>}]} {
    %c0 = arith.constant 0 : index
    %c0_0 = arith.constant 0 : index
    %0 = vector.load %arg1[%c0, %c0_0] : memref<16x256xbf16, #tpu.memory_space<vmem>>, vector<16x256xbf16>
    %1 = arith.extf %0 : vector<16x256xbf16> to vector<16x256xf32>
    %c0_1 = arith.constant 0 : index
    %c0_2 = arith.constant 0 : index
    %2 = vector.load %arg2[%c0_1, %c0_2] : memref<16x256xbf16, #tpu.memory_space<vmem>>, vector<16x256xbf16>
    %3 = arith.extf %2 : vector<16x256xbf16> to vector<16x256xf32>
    %c0_3 = arith.constant 0 : index
    %c0_4 = arith.constant 0 : index
    %4 = vector.load %arg6[%c0_3, %c0_4] : memref<16x128xf32, #tpu.memory_space<vmem>>, vector<1x128xf32>
    %c1 = arith.constant 1 : index
    %c0_5 = arith.constant 0 : index
    %5 = vector.load %arg6[%c1, %c0_5] : memref<16x128xf32, #tpu.memory_space<vmem>>, vector<1x128xf32>
    %c2 = arith.constant 2 : index
    %c0_6 = arith.constant 0 : index
    %6 = vector.load %arg6[%c2, %c0_6] : memref<16x128xf32, #tpu.memory_space<vmem>>, vector<1x128xf32>
    %c3 = arith.constant 3 : index
    %c0_7 = arith.constant 0 : index
    %7 = vector.load %arg6[%c3, %c0_7] : memref<16x128xf32, #tpu.memory_space<vmem>>, vector<1x128xf32>
    %c4 = arith.constant 4 : index
    %c0_8 = arith.constant 0 : index
    %8 = vector.load %arg6[%c4, %c0_8] : memref<16x128xf32, #tpu.memory_space<vmem>>, vector<1x128xf32>
    %c5 = arith.constant 5 : index
    %c0_9 = arith.constant 0 : index
    %9 = vector.load %arg6[%c5, %c0_9] : memref<16x128xf32, #tpu.memory_space<vmem>>, vector<1x128xf32>
    %c6 = arith.constant 6 : index
    %c0_10 = arith.constant 0 : index
    %10 = vector.load %arg6[%c6, %c0_10] : memref<16x128xf32, #tpu.memory_space<vmem>>, vector<1x128xf32>
    %c7 = arith.constant 7 : index
    %c0_11 = arith.constant 0 : index
    %11 = vector.load %arg6[%c7, %c0_11] : memref<16x128xf32, #tpu.memory_space<vmem>>, vector<1x128xf32>
    %c8 = arith.constant 8 : index
    %c0_12 = arith.constant 0 : index
    %12 = vector.load %arg6[%c8, %c0_12] : memref<16x128xf32, #tpu.memory_space<vmem>>, vector<1x128xf32>
    %cst = arith.constant dense<0.000000e+00> : vector<16xf32>
    %13 = vector.multi_reduction <add>, %1, %cst [1] : vector<16x256xf32> to vector<16xf32>
    %14 = vector.shape_cast %13 : vector<16xf32> to vector<16x1xf32>
    %cst_13 = arith.constant 2.560000e+02 : f32
    %15 = vector.broadcast %cst_13 : f32 to vector<16x1xf32>
    %16 = arith.divf %14, %15 : vector<16x1xf32>
    %17 = vector.broadcast %16 : vector<16x1xf32> to vector<16x256xf32>
    %18 = arith.subf %1, %17 : vector<16x256xf32>
    %19 = arith.mulf %18, %18 : vector<16x256xf32>
    %cst_14 = arith.constant dense<0.000000e+00> : vector<16xf32>
    %20 = vector.multi_reduction <add>, %19, %cst_14 [1] : vector<16x256xf32> to vector<16xf32>
    %21 = vector.shape_cast %20 : vector<16xf32> to vector<16x1xf32>
    %cst_15 = arith.constant 2.560000e+02 : f32
    %22 = vector.broadcast %cst_15 : f32 to vector<16x1xf32>
    %23 = arith.divf %21, %22 : vector<16x1xf32>
    %24 = vector.broadcast %16 : vector<16x1xf32> to vector<16x256xf32>
    %25 = arith.subf %1, %24 : vector<16x256xf32>
    %cst_16 = arith.constant 9.99999974E-6 : f32
    %26 = vector.broadcast %cst_16 : f32 to vector<16x1xf32>
    %27 = arith.addf %23, %26 : vector<16x1xf32>
    %28 = math.rsqrt %27 : vector<16x1xf32>
    %29 = vector.broadcast %28 : vector<16x1xf32> to vector<16x256xf32>
    %30 = arith.mulf %25, %29 : vector<16x256xf32>
    %31 = arith.truncf %30 : vector<16x256xf32> to vector<16x256xbf16>
    %c0_17 = arith.constant 0 : index
    %c0_18 = arith.constant 0 : index
    %32 = vector.load %arg3[%c0_17, %c0_18] : memref<256x128xbf16, #tpu.memory_space<vmem>>, vector<256x128xbf16>
    %cst_19 = arith.constant dense<0.000000e+00> : vector<16x128xf32>
    %33 = tpu.matmul %31, %32, %cst_19 {dimension_numbers = #tpu.dot_dimension_numbers<[1], [0], [0], [1], [0, 0, 1, 1], [], []>} : vector<16x256xbf16>, vector<256x128xbf16>, vector<16x128xf32> -> vector<16x128xf32>
    %34 = vector.broadcast %4 : vector<1x128xf32> to vector<16x128xf32>
    %35 = arith.addf %33, %34 : vector<16x128xf32>
    %36 = arith.mulf %35, %35 : vector<16x128xf32>
    %37 = arith.mulf %35, %36 : vector<16x128xf32>
    %cst_20 = arith.constant 4.471500e-02 : f32
    %38 = vector.broadcast %cst_20 : f32 to vector<16x128xf32>
    %39 = arith.mulf %38, %37 : vector<16x128xf32>
    %40 = arith.addf %35, %39 : vector<16x128xf32>
    %cst_21 = arith.constant 0.797884583 : f32
    %41 = vector.broadcast %cst_21 : f32 to vector<16x128xf32>
    %42 = arith.mulf %41, %40 : vector<16x128xf32>
    %43 = math.tanh %42 : vector<16x128xf32>
    %cst_22 = arith.constant 1.000000e+00 : f32
    %44 = vector.broadcast %cst_22 : f32 to vector<16x128xf32>
    %45 = arith.addf %44, %43 : vector<16x128xf32>
    %cst_23 = arith.constant 5.000000e-01 : f32
    %46 = vector.broadcast %cst_23 : f32 to vector<16x128xf32>
    %47 = arith.mulf %46, %45 : vector<16x128xf32>
    %48 = arith.mulf %35, %47 : vector<16x128xf32>
    %cst_24 = arith.constant dense<0.000000e+00> : vector<16xf32>
    %49 = vector.multi_reduction <add>, %48, %cst_24 [1] : vector<16x128xf32> to vector<16xf32>
    %50 = vector.shape_cast %49 : vector<16xf32> to vector<16x1xf32>
    %cst_25 = arith.constant 1.280000e+02 : f32
    %51 = vector.broadcast %cst_25 : f32 to vector<16x1xf32>
    %52 = arith.divf %50, %51 : vector<16x1xf32>
    %53 = arith.mulf %48, %48 : vector<16x128xf32>
    %cst_26 = arith.constant dense<0.000000e+00> : vector<16xf32>
    %54 = vector.multi_reduction <add>, %53, %cst_26 [1] : vector<16x128xf32> to vector<16xf32>
    %55 = vector.shape_cast %54 : vector<16xf32> to vector<16x1xf32>
    %cst_27 = arith.constant 1.280000e+02 : f32
    %56 = vector.broadcast %cst_27 : f32 to vector<16x1xf32>
    %57 = arith.divf %55, %56 : vector<16x1xf32>
    %58 = arith.mulf %52, %52 : vector<16x1xf32>
    %59 = arith.subf %57, %58 : vector<16x1xf32>
    %cst_28 = arith.constant 0.000000e+00 : f32
    %60 = vector.broadcast %cst_28 : f32 to vector<16x1xf32>
    %61 = arith.maximumf %59, %60 : vector<16x1xf32>
    %62 = vector.broadcast %52 : vector<16x1xf32> to vector<16x128xf32>
    %63 = arith.subf %48, %62 : vector<16x128xf32>
    %cst_29 = arith.constant 9.99999974E-6 : f32
    %64 = vector.broadcast %cst_29 : f32 to vector<16x1xf32>
    %65 = arith.addf %61, %64 : vector<16x1xf32>
    %66 = math.rsqrt %65 : vector<16x1xf32>
    %67 = vector.broadcast %66 : vector<16x1xf32> to vector<16x128xf32>
    %68 = arith.mulf %63, %67 : vector<16x128xf32>
    %69 = vector.broadcast %5 : vector<1x128xf32> to vector<16x128xf32>
    %70 = arith.mulf %68, %69 : vector<16x128xf32>
    %71 = vector.broadcast %6 : vector<1x128xf32> to vector<16x128xf32>
    %72 = arith.addf %70, %71 : vector<16x128xf32>
    %73 = arith.truncf %3 : vector<16x256xf32> to vector<16x256xbf16>
    %c0_30 = arith.constant 0 : index
    %c0_31 = arith.constant 0 : index
    %74 = vector.load %arg4[%c0_30, %c0_31] : memref<256x128xbf16, #tpu.memory_space<vmem>>, vector<256x128xbf16>
    %cst_32 = arith.constant dense<0.000000e+00> : vector<16x128xf32>
    %75 = tpu.matmul %73, %74, %cst_32 {dimension_numbers = #tpu.dot_dimension_numbers<[1], [0], [0], [1], [0, 0, 1, 1], [], []>} : vector<16x256xbf16>, vector<256x128xbf16>, vector<16x128xf32> -> vector<16x128xf32>
    %76 = vector.broadcast %7 : vector<1x128xf32> to vector<16x128xf32>
    %77 = arith.addf %75, %76 : vector<16x128xf32>
    %cst_33 = arith.constant dense<0.000000e+00> : vector<16xf32>
    %78 = vector.multi_reduction <add>, %77, %cst_33 [1] : vector<16x128xf32> to vector<16xf32>
    %79 = vector.shape_cast %78 : vector<16xf32> to vector<16x1xf32>
    %cst_34 = arith.constant 1.280000e+02 : f32
    %80 = vector.broadcast %cst_34 : f32 to vector<16x1xf32>
    %81 = arith.divf %79, %80 : vector<16x1xf32>
    %82 = arith.mulf %77, %77 : vector<16x128xf32>
    %cst_35 = arith.constant dense<0.000000e+00> : vector<16xf32>
    %83 = vector.multi_reduction <add>, %82, %cst_35 [1] : vector<16x128xf32> to vector<16xf32>
    %84 = vector.shape_cast %83 : vector<16xf32> to vector<16x1xf32>
    %cst_36 = arith.constant 1.280000e+02 : f32
    %85 = vector.broadcast %cst_36 : f32 to vector<16x1xf32>
    %86 = arith.divf %84, %85 : vector<16x1xf32>
    %87 = arith.mulf %81, %81 : vector<16x1xf32>
    %88 = arith.subf %86, %87 : vector<16x1xf32>
    %cst_37 = arith.constant 0.000000e+00 : f32
    %89 = vector.broadcast %cst_37 : f32 to vector<16x1xf32>
    %90 = arith.maximumf %88, %89 : vector<16x1xf32>
    %91 = vector.broadcast %81 : vector<16x1xf32> to vector<16x128xf32>
    %92 = arith.subf %77, %91 : vector<16x128xf32>
    %cst_38 = arith.constant 9.99999974E-6 : f32
    %93 = vector.broadcast %cst_38 : f32 to vector<16x1xf32>
    %94 = arith.addf %90, %93 : vector<16x1xf32>
    %95 = math.rsqrt %94 : vector<16x1xf32>
    %96 = vector.broadcast %95 : vector<16x1xf32> to vector<16x128xf32>
    %97 = arith.mulf %92, %96 : vector<16x128xf32>
    %98 = vector.broadcast %8 : vector<1x128xf32> to vector<16x128xf32>
    %99 = arith.mulf %97, %98 : vector<16x128xf32>
    %100 = vector.broadcast %9 : vector<1x128xf32> to vector<16x128xf32>
    %101 = arith.addf %99, %100 : vector<16x128xf32>
    %c0_39 = arith.constant 0 : index
    %c0_40 = arith.constant 0 : index
    %102 = memref.load %arg7[%c0_39, %c0_40] : memref<1x1xf32, #tpu.memory_space<smem>>
    %103 = arith.negf %101 : vector<16x128xf32>
    %104 = math.exp %103 : vector<16x128xf32>
    %cst_41 = arith.constant 1.000000e+00 : f32
    %105 = vector.broadcast %cst_41 : f32 to vector<16x128xf32>
    %106 = arith.addf %105, %104 : vector<16x128xf32>
    %107 = arith.divf %105, %106 : vector<16x128xf32>
    %108 = vector.broadcast %102 : f32 to vector<16x128xf32>
    %109 = arith.mulf %108, %107 : vector<16x128xf32>
    %cst_42 = arith.constant 1.000000e+00 : f32
    %110 = vector.broadcast %cst_42 : f32 to vector<16x128xf32>
    %111 = arith.addf %110, %109 : vector<16x128xf32>
    %112 = arith.mulf %72, %111 : vector<16x128xf32>
    %113 = arith.truncf %112 : vector<16x128xf32> to vector<16x128xbf16>
    %c0_43 = arith.constant 0 : index
    %c0_44 = arith.constant 0 : index
    %114 = vector.load %arg5[%c0_43, %c0_44] : memref<128x128xbf16, #tpu.memory_space<vmem>>, vector<128x128xbf16>
    %cst_45 = arith.constant dense<0.000000e+00> : vector<16x128xf32>
    %115 = tpu.matmul %113, %114, %cst_45 {dimension_numbers = #tpu.dot_dimension_numbers<[1], [0], [0], [1], [0, 0, 1, 1], [], []>} : vector<16x128xbf16>, vector<128x128xbf16>, vector<16x128xf32> -> vector<16x128xf32>
    %116 = vector.broadcast %10 : vector<1x128xf32> to vector<16x128xf32>
    %117 = arith.addf %115, %116 : vector<16x128xf32>
    %118 = arith.addf %117, %72 : vector<16x128xf32>
    %cst_46 = arith.constant dense<0.000000e+00> : vector<16xf32>
    %119 = vector.multi_reduction <add>, %118, %cst_46 [1] : vector<16x128xf32> to vector<16xf32>
    %120 = vector.shape_cast %119 : vector<16xf32> to vector<16x1xf32>
    %cst_47 = arith.constant 1.280000e+02 : f32
    %121 = vector.broadcast %cst_47 : f32 to vector<16x1xf32>
    %122 = arith.divf %120, %121 : vector<16x1xf32>
    %123 = arith.mulf %118, %118 : vector<16x128xf32>
    %cst_48 = arith.constant dense<0.000000e+00> : vector<16xf32>
    %124 = vector.multi_reduction <add>, %123, %cst_48 [1] : vector<16x128xf32> to vector<16xf32>
    %125 = vector.shape_cast %124 : vector<16xf32> to vector<16x1xf32>
    %cst_49 = arith.constant 1.280000e+02 : f32
    %126 = vector.broadcast %cst_49 : f32 to vector<16x1xf32>
    %127 = arith.divf %125, %126 : vector<16x1xf32>
    %128 = arith.mulf %122, %122 : vector<16x1xf32>
    %129 = arith.subf %127, %128 : vector<16x1xf32>
    %cst_50 = arith.constant 0.000000e+00 : f32
    %130 = vector.broadcast %cst_50 : f32 to vector<16x1xf32>
    %131 = arith.maximumf %129, %130 : vector<16x1xf32>
    %132 = vector.broadcast %122 : vector<16x1xf32> to vector<16x128xf32>
    %133 = arith.subf %118, %132 : vector<16x128xf32>
    %cst_51 = arith.constant 9.99999974E-6 : f32
    %134 = vector.broadcast %cst_51 : f32 to vector<16x1xf32>
    %135 = arith.addf %131, %134 : vector<16x1xf32>
    %136 = math.rsqrt %135 : vector<16x1xf32>
    %137 = vector.broadcast %136 : vector<16x1xf32> to vector<16x128xf32>
    %138 = arith.mulf %133, %137 : vector<16x128xf32>
    %139 = vector.broadcast %11 : vector<1x128xf32> to vector<16x128xf32>
    %140 = arith.mulf %138, %139 : vector<16x128xf32>
    %141 = vector.broadcast %12 : vector<1x128xf32> to vector<16x128xf32>
    %142 = arith.addf %140, %141 : vector<16x128xf32>
    %c0_52 = arith.constant 0 : index
    %c0_53 = arith.constant 0 : index
    %143 = vector.load %arg8[%c0_52, %c0_53] : memref<16x128xf32, #tpu.memory_space<vmem>>, vector<16x128xf32>
    tpu.vector_store %arg8[%c0_52, %c0_53], %142 {strides = array<i32>} : memref<16x128xf32, #tpu.memory_space<vmem>>, vector<16x128xf32>,
    return
  }
  func.func @transform_0(%arg0: i32) -> (i32, i32) {
    %c0_i32 = arith.constant 0 : i32
    %c0_i32_0 = arith.constant 0 : i32
    return %arg0, %c0_i32 : i32, i32
  }
  func.func @transform_1(%arg0: i32) -> (i32, i32) {
    %c0_i32 = arith.constant 0 : i32
    %c0_i32_0 = arith.constant 0 : i32
    return %arg0, %c0_i32 : i32, i32
  }
  func.func @transform_2(%arg0: i32) -> (i32, i32) {
    %c0_i32 = arith.constant 0 : i32
    %c0_i32_0 = arith.constant 0 : i32
    %c0_i32_1 = arith.constant 0 : i32
    return %c0_i32, %c0_i32_0 : i32, i32
  }
  func.func @transform_3(%arg0: i32) -> (i32, i32) {
    %c0_i32 = arith.constant 0 : i32
    %c0_i32_0 = arith.constant 0 : i32
    %c0_i32_1 = arith.constant 0 : i32
    return %c0_i32, %c0_i32_0 : i32, i32
  }
  func.func @transform_4(%arg0: i32) -> (i32, i32) {
    %c0_i32 = arith.constant 0 : i32
    %c0_i32_0 = arith.constant 0 : i32
    %c0_i32_1 = arith.constant 0 : i32
    return %c0_i32, %c0_i32_0 : i32, i32
  }
  func.func @transform_5(%arg0: i32) -> (i32, i32) {
    %c0_i32 = arith.constant 0 : i32
    %c0_i32_0 = arith.constant 0 : i32
    %c0_i32_1 = arith.constant 0 : i32
    return %c0_i32, %c0_i32_0 : i32, i32
  }
  func.func @transform_6(%arg0: i32) -> (i32, i32) {
    %c0_i32 = arith.constant 0 : i32
    %c0_i32_0 = arith.constant 0 : i32
    %c0_i32_1 = arith.constant 0 : i32
    return %c0_i32, %c0_i32_0 : i32, i32
  }
  func.func @transform_7(%arg0: i32) -> (i32, i32) {
    %c0_i32 = arith.constant 0 : i32
    %c0_i32_0 = arith.constant 0 : i32
    return %arg0, %c0_i32 : i32, i32
  }
}

module attributes {stable_mosaic.version = 11 : i64} {
  func.func @shap_attention_kernel(%arg0: i32, %arg1: memref<16x256xbf16, #tpu.memory_space<vmem>>, %arg2: memref<16x256xbf16, #tpu.memory_space<vmem>>, %arg3: memref<256x128xbf16, #tpu.memory_space<vmem>>, %arg4: memref<256x128xbf16, #tpu.memory_space<vmem>>, %arg5: memref<128x128xbf16, #tpu.memory_space<vmem>>, %arg6: memref<16x128xf32, #tpu.memory_space<vmem>>, %arg7: memref<1x1xf32, #tpu.memory_space<smem>>, %arg8: memref<16x128xf32, #tpu.memory_space<vmem>>) attributes {dimension_semantics = [#tpu.dimension_semantics<parallel>], iteration_bounds = array<i64: 2>, scalar_prefetch = 0 : i64, scratch_operands = 0 : i64, tpu.core_type = #tpu.core_type<tc>, window_params = [{transform_indices = @transform_0, window_bounds = array<i64: 16, 256>}, {transform_indices = @transform_1, window_bounds = array<i64: 16, 256>}, {pipeline_mode = #tpu.pipeline_mode<synchronous>, transform_indices = @transform_2, window_bounds = array<i64: 256, 128>}, {pipeline_mode = #tpu.pipeline_mode<synchronous>, transform_indices = @transform_3, window_bounds = array<i64: 256, 128>}, {pipeline_mode = #tpu.pipeline_mode<synchronous>, transform_indices = @transform_4, window_bounds = array<i64: 128, 128>}, {pipeline_mode = #tpu.pipeline_mode<synchronous>, transform_indices = @transform_5, window_bounds = array<i64: 16, 128>}, {transform_indices = @transform_6, window_bounds = array<i64: 1, 1>}, {transform_indices = @transform_7, window_bounds = array<i64: 16, 128>}]} {
    %c0 = arith.constant 0 : index
    %c0_0 = arith.constant 0 : index
    %0 = vector.load %arg1[%c0, %c0_0] : memref<16x256xbf16, #tpu.memory_space<vmem>>, vector<16x256xbf16>
    %1 = arith.extf %0 : vector<16x256xbf16> to vector<16x256xf32>
    %c0_1 = arith.constant 0 : index
    %c0_2 = arith.constant 0 : index
    %2 = vector.load %arg2[%c0_1, %c0_2] : memref<16x256xbf16, #tpu.memory_space<vmem>>, vector<16x256xbf16>
    %3 = arith.extf %2 : vector<16x256xbf16> to vector<16x256xf32>
    %c0_3 = arith.constant 0 : index
    %c0_4 = arith.constant 0 : index
    %4 = vector.load %arg6[%c0_3, %c0_4] : memref<16x128xf32, #tpu.memory_space<vmem>>, vector<1x128xf32>
    %c1 = arith.constant 1 : index
    %c0_5 = arith.constant 0 : index
    %5 = vector.load %arg6[%c1, %c0_5] : memref<16x128xf32, #tpu.memory_space<vmem>>, vector<1x128xf32>
    %c2 = arith.constant 2 : index
    %c0_6 = arith.constant 0 : index
    %6 = vector.load %arg6[%c2, %c0_6] : memref<16x128xf32, #tpu.memory_space<vmem>>, vector<1x128xf32>
    %c3 = arith.constant 3 : index
    %c0_7 = arith.constant 0 : index
    %7 = vector.load %arg6[%c3, %c0_7] : memref<16x128xf32, #tpu.memory_space<vmem>>, vector<1x128xf32>
    %c4 = arith.constant 4 : index
    %c0_8 = arith.constant 0 : index
    %8 = vector.load %arg6[%c4, %c0_8] : memref<16x128xf32, #tpu.memory_space<vmem>>, vector<1x128xf32>
    %c5 = arith.constant 5 : index
    %c0_9 = arith.constant 0 : index
    %9 = vector.load %arg6[%c5, %c0_9] : memref<16x128xf32, #tpu.memory_space<vmem>>, vector<1x128xf32>
    %c6 = arith.constant 6 : index
    %c0_10 = arith.constant 0 : index
    %10 = vector.load %arg6[%c6, %c0_10] : memref<16x128xf32, #tpu.memory_space<vmem>>, vector<1x128xf32>
    %c7 = arith.constant 7 : index
    %c0_11 = arith.constant 0 : index
    %11 = vector.load %arg6[%c7, %c0_11] : memref<16x128xf32, #tpu.memory_space<vmem>>, vector<1x128xf32>
    %c8 = arith.constant 8 : index
    %c0_12 = arith.constant 0 : index
    %12 = vector.load %arg6[%c8, %c0_12] : memref<16x128xf32, #tpu.memory_space<vmem>>, vector<1x128xf32>
    %cst = arith.constant dense<0.000000e+00> : vector<16xf32>
    %13 = vector.multi_reduction <add>, %1, %cst [1] : vector<16x256xf32> to vector<16xf32>
    %14 = vector.shape_cast %13 : vector<16xf32> to vector<16x1xf32>
    %cst_13 = arith.constant 2.560000e+02 : f32
    %15 = vector.broadcast %cst_13 : f32 to vector<16x1xf32>
    %16 = arith.divf %14, %15 : vector<16x1xf32>
    %17 = vector.broadcast %16 : vector<16x1xf32> to vector<16x256xf32>
    %18 = arith.subf %1, %17 : vector<16x256xf32>
    %19 = arith.mulf %18, %18 : vector<16x256xf32>
    %cst_14 = arith.constant dense<0.000000e+00> : vector<16xf32>
    %20 = vector.multi_reduction <add>, %19, %cst_14 [1] : vector<16x256xf32> to vector<16xf32>
    %21 = vector.shape_cast %20 : vector<16xf32> to vector<16x1xf32>
    %cst_15 = arith.constant 2.560000e+02 : f32
    %22 = vector.broadcast %cst_15 : f32 to vector<16x1xf32>
    %23 = arith.divf %21, %22 : vector<16x1xf32>
    %24 = vector.broadcast %16 : vector<16x1xf32> to vector<16x256xf32>
    %25 = arith.subf %1, %24 : vector<16x256xf32>
    %cst_16 = arith.constant 9.99999974E-6 : f32
    %26 = vector.broadcast %cst_16 : f32 to vector<16x1xf32>
    %27 = arith.addf %23, %26 : vector<16x1xf32>
    %28 = math.rsqrt %27 : vector<16x1xf32>
    %29 = vector.broadcast %28 : vector<16x1xf32> to vector<16x256xf32>
    %30 = arith.mulf %25, %29 : vector<16x256xf32>
    %31 = arith.truncf %30 : vector<16x256xf32> to vector<16x256xbf16>
    %c0_17 = arith.constant 0 : index
    %c0_18 = arith.constant 0 : index
    %32 = vector.load %arg3[%c0_17, %c0_18] : memref<256x128xbf16, #tpu.memory_space<vmem>>, vector<256x128xbf16>
    %cst_19 = arith.constant dense<0.000000e+00> : vector<16x128xf32>
    %33 = tpu.matmul %31, %32, %cst_19 {dimension_numbers = #tpu.dot_dimension_numbers<[1], [0], [0], [1], [0, 0, 1, 1], [], []>} : vector<16x256xbf16>, vector<256x128xbf16>, vector<16x128xf32> -> vector<16x128xf32>
    %34 = vector.broadcast %4 : vector<1x128xf32> to vector<16x128xf32>
    %35 = arith.addf %33, %34 : vector<16x128xf32>
    %36 = arith.mulf %35, %35 : vector<16x128xf32>
    %37 = arith.mulf %35, %36 : vector<16x128xf32>
    %cst_20 = arith.constant 4.471500e-02 : f32
    %38 = vector.broadcast %cst_20 : f32 to vector<16x128xf32>
    %39 = arith.mulf %38, %37 : vector<16x128xf32>
    %40 = arith.addf %35, %39 : vector<16x128xf32>
    %cst_21 = arith.constant 0.797884583 : f32
    %41 = vector.broadcast %cst_21 : f32 to vector<16x128xf32>
    %42 = arith.mulf %41, %40 : vector<16x128xf32>
    %43 = math.tanh %42 : vector<16x128xf32>
    %cst_22 = arith.constant 1.000000e+00 : f32
    %44 = vector.broadcast %cst_22 : f32 to vector<16x128xf32>
    %45 = arith.addf %44, %43 : vector<16x128xf32>
    %cst_23 = arith.constant 5.000000e-01 : f32
    %46 = vector.broadcast %cst_23 : f32 to vector<16x128xf32>
    %47 = arith.mulf %46, %45 : vector<16x128xf32>
    %48 = arith.mulf %35, %47 : vector<16x128xf32>
    %cst_24 = arith.constant dense<0.000000e+00> : vector<16xf32>
    %49 = vector.multi_reduction <add>, %48, %cst_24 [1] : vector<16x128xf32> to vector<16xf32>
    %50 = vector.shape_cast %49 : vector<16xf32> to vector<16x1xf32>
    %cst_25 = arith.constant 1.280000e+02 : f32
    %51 = vector.broadcast %cst_25 : f32 to vector<16x1xf32>
    %52 = arith.divf %50, %51 : vector<16x1xf32>
    %53 = arith.mulf %48, %48 : vector<16x128xf32>
    %cst_26 = arith.constant dense<0.000000e+00> : vector<16xf32>
    %54 = vector.multi_reduction <add>, %53, %cst_26 [1] : vector<16x128xf32> to vector<16xf32>
    %55 = vector.shape_cast %54 : vector<16xf32> to vector<16x1xf32>
    %cst_27 = arith.constant 1.280000e+02 : f32
    %56 = vector.broadcast %cst_27 : f32 to vector<16x1xf32>
    %57 = arith.divf %55, %56 : vector<16x1xf32>
    %58 = arith.mulf %52, %52 : vector<16x1xf32>
    %59 = arith.subf %57, %58 : vector<16x1xf32>
    %cst_28 = arith.constant 0.000000e+00 : f32
    %60 = vector.broadcast %cst_28 : f32 to vector<16x1xf32>
    %61 = arith.maximumf %59, %60 : vector<16x1xf32>
    %62 = vector.broadcast %52 : vector<16x1xf32> to vector<16x128xf32>
    %63 = arith.subf %48, %62 : vector<16x128xf32>
    %cst_29 = arith.constant 9.99999974E-6 : f32
    %64 = vector.broadcast %cst_29 : f32 to vector<16x1xf32>
    %65 = arith.addf %61, %64 : vector<16x1xf32>
    %66 = math.rsqrt %65 : vector<16x1xf32>
    %67 = vector.broadcast %66 : vector<16x1xf32> to vector<16x128xf32>
    %68 = arith.mulf %63, %67 : vector<16x128xf32>
    %69 = vector.broadcast %5 : vector<1x128xf32> to vector<16x128xf32>
    %70 = arith.mulf %68, %69 : vector<16x128xf32>
    %71 = vector.broadcast %6 : vector<1x128xf32> to vector<16x128xf32>
    %72 = arith.addf %70, %71 : vector<16x128xf32>
    %73 = arith.truncf %3 : vector<16x256xf32> to vector<16x256xbf16>
    %c0_30 = arith.constant 0 : index
    %c0_31 = arith.constant 0 : index
    %74 = vector.load %arg4[%c0_30, %c0_31] : memref<256x128xbf16, #tpu.memory_space<vmem>>, vector<256x128xbf16>
    %cst_32 = arith.constant dense<0.000000e+00> : vector<16x128xf32>
    %75 = tpu.matmul %73, %74, %cst_32 {dimension_numbers = #tpu.dot_dimension_numbers<[1], [0], [0], [1], [0, 0, 1, 1], [], []>} : vector<16x256xbf16>, vector<256x128xbf16>, vector<16x128xf32> -> vector<16x128xf32>
    %76 = vector.broadcast %7 : vector<1x128xf32> to vector<16x128xf32>
    %77 = arith.addf %75, %76 : vector<16x128xf32>
    %cst_33 = arith.constant dense<0.000000e+00> : vector<16xf32>
    %78 = vector.multi_reduction <add>, %77, %cst_33 [1] : vector<16x128xf32> to vector<16xf32>
    %79 = vector.shape_cast %78 : vector<16xf32> to vector<16x1xf32>
    %cst_34 = arith.constant 1.280000e+02 : f32
    %80 = vector.broadcast %cst_34 : f32 to vector<16x1xf32>
    %81 = arith.divf %79, %80 : vector<16x1xf32>
    %82 = arith.mulf %77, %77 : vector<16x128xf32>
    %cst_35 = arith.constant dense<0.000000e+00> : vector<16xf32>
    %83 = vector.multi_reduction <add>, %82, %cst_35 [1] : vector<16x128xf32> to vector<16xf32>
    %84 = vector.shape_cast %83 : vector<16xf32> to vector<16x1xf32>
    %cst_36 = arith.constant 1.280000e+02 : f32
    %85 = vector.broadcast %cst_36 : f32 to vector<16x1xf32>
    %86 = arith.divf %84, %85 : vector<16x1xf32>
    %87 = arith.mulf %81, %81 : vector<16x1xf32>
    %88 = arith.subf %86, %87 : vector<16x1xf32>
    %cst_37 = arith.constant 0.000000e+00 : f32
    %89 = vector.broadcast %cst_37 : f32 to vector<16x1xf32>
    %90 = arith.maximumf %88, %89 : vector<16x1xf32>
    %91 = vector.broadcast %81 : vector<16x1xf32> to vector<16x128xf32>
    %92 = arith.subf %77, %91 : vector<16x128xf32>
    %cst_38 = arith.constant 9.99999974E-6 : f32
    %93 = vector.broadcast %cst_38 : f32 to vector<16x1xf32>
    %94 = arith.addf %90, %93 : vector<16x1xf32>
    %95 = math.rsqrt %94 : vector<16x1xf32>
    %96 = vector.broadcast %95 : vector<16x1xf32> to vector<16x128xf32>
    %97 = arith.mulf %92, %96 : vector<16x128xf32>
    %98 = vector.broadcast %8 : vector<1x128xf32> to vector<16x128xf32>
    %99 = arith.mulf %97, %98 : vector<16x128xf32>
    %100 = vector.broadcast %9 : vector<1x128xf32> to vector<16x128xf32>
    %101 = arith.addf %99, %100 : vector<16x128xf32>
    %c0_39 = arith.constant 0 : index
    %c0_40 = arith.constant 0 : index
    %102 = memref.load %arg7[%c0_39, %c0_40] : memref<1x1xf32, #tpu.memory_space<smem>>
    %103 = arith.negf %101 : vector<16x128xf32>
    %104 = math.exp %103 : vector<16x128xf32>
    %cst_41 = arith.constant 1.000000e+00 : f32
    %105 = vector.broadcast %cst_41 : f32 to vector<16x128xf32>
    %106 = arith.addf %105, %104 : vector<16x128xf32>
    %107 = arith.divf %105, %106 : vector<16x128xf32>
    %108 = vector.broadcast %102 : f32 to vector<16x128xf32>
    %109 = arith.mulf %108, %107 : vector<16x128xf32>
    %cst_42 = arith.constant 1.000000e+00 : f32
    %110 = vector.broadcast %cst_42 : f32 to vector<16x128xf32>
    %111 = arith.addf %110, %109 : vector<16x128xf32>
    %112 = arith.mulf %72, %111 : vector<16x128xf32>
    %113 = arith.truncf %112 : vector<16x128xf32> to vector<16x128xbf16>
    %c0_43 = arith.constant 0 : index
    %c0_44 = arith.constant 0 : index
    %114 = vector.load %arg5[%c0_43, %c0_44] : memref<128x128xbf16, #tpu.memory_space<vmem>>, vector<128x128xbf16>
    %cst_45 = arith.constant dense<0.000000e+00> : vector<16x128xf32>
    %115 = tpu.matmul %113, %114, %cst_45 {dimension_numbers = #tpu.dot_dimension_numbers<[1], [0], [0], [1], [0, 0, 1, 1], [], []>} : vector<16x128xbf16>, vector<128x128xbf16>, vector<16x128xf32> -> vector<16x128xf32>
    %116 = vector.broadcast %10 : vector<1x128xf32> to vector<16x128xf32>
    %117 = arith.addf %115, %116 : vector<16x128xf32>
    %118 = arith.addf %117, %72 : vector<16x128xf32>
    %cst_46 = arith.constant dense<0.000000e+00> : vector<16xf32>
    %119 = vector.multi_reduction <add>, %118, %cst_46 [1] : vector<16x128xf32> to vector<16xf32>
    %120 = vector.shape_cast %119 : vector<16xf32> to vector<16x1xf32>
    %cst_47 = arith.constant 1.280000e+02 : f32
    %121 = vector.broadcast %cst_47 : f32 to vector<16x1xf32>
    %122 = arith.divf %120, %121 : vector<16x1xf32>
    %123 = arith.mulf %118, %118 : vector<16x128xf32>
    %cst_48 = arith.constant dense<0.000000e+00> : vector<16xf32>
    %124 = vector.multi_reduction <add>, %123, %cst_48 [1] : vector<16x128xf32> to vector<16xf32>
    %125 = vector.shape_cast %124 : vector<16xf32> to vector<16x1xf32>
    %cst_49 = arith.constant 1.280000e+02 : f32
    %126 = vector.broadcast %cst_49 : f32 to vector<16x1xf32>
    %127 = arith.divf %125, %126 : vector<16x1xf32>
    %128 = arith.mulf %122, %122 : vector<16x1xf32>
    %129 = arith.subf %127, %128 : vector<16x1xf32>
    %cst_50 = arith.constant 0.000000e+00 : f32
    %130 = vector.broadcast %cst_50 : f32 to vector<16x1xf32>
    %131 = arith.maximumf %129, %130 : vector<16x1xf32>
    %132 = vector.broadcast %122 : vector<16x1xf32> to vector<16x128xf32>
    %133 = arith.subf %118, %132 : vector<16x128xf32>
    %cst_51 = arith.constant 9.99999974E-6 : f32
    %134 = vector.broadcast %cst_51 : f32 to vector<16x1xf32>
    %135 = arith.addf %131, %134 : vector<16x1xf32>
    %136 = math.rsqrt %135 : vector<16x1xf32>
    %137 = vector.broadcast %136 : vector<16x1xf32> to vector<16x128xf32>
    %138 = arith.mulf %133, %137 : vector<16x128xf32>
    %139 = vector.broadcast %11 : vector<1x128xf32> to vector<16x128xf32>
    %140 = arith.mulf %138, %139 : vector<16x128xf32>
    %141 = vector.broadcast %12 : vector<1x128xf32> to vector<16x128xf32>
    %142 = arith.addf %140, %141 : vector<16x128xf32>
    %c0_52 = arith.constant 0 : index
    %c0_53 = arith.constant 0 : index
    %143 = vector.load %arg8[%c0_52, %c0_53] : memref<16x128xf32, #tpu.memory_space<vmem>>, vector<16x128xf32>
    tpu.vector_store %arg8[%c0_52, %c0_53], %142 {strides = array<i32>} : memref<16x128xf32, #tpu.memory_space<vmem>>, vector<16x128xf32>,
    return
  }
  func.func @transform_0(%arg0: i32) -> (i32, i32) {
    %c0_i32 = arith.constant 0 : i32
    %c0_i32_0 = arith.constant 0 : i32
    return %arg0, %c0_i32 : i32, i32
  }
  func.func @transform_1(%arg0: i32) -> (i32, i32) {
    %c0_i32 = arith.constant 0 : i32
    %c0_i32_0 = arith.constant 0 : i32
    return %arg0, %c0_i32 : i32, i32
  }
  func.func @transform_2(%arg0: i32) -> (i32, i32) {
    %c0_i32 = arith.constant 0 : i32
    %c0_i32_0 = arith.constant 0 : i32
    %c0_i32_1 = arith.constant 0 : i32
    return %c0_i32, %c0_i32_0 : i32, i32
  }
  func.func @transform_3(%arg0: i32) -> (i32, i32) {
    %c0_i32 = arith.constant 0 : i32
    %c0_i32_0 = arith.constant 0 : i32
    %c0_i32_1 = arith.constant 0 : i32
    return %c0_i32, %c0_i32_0 : i32, i32
  }
  func.func @transform_4(%arg0: i32) -> (i32, i32) {
    %c0_i32 = arith.constant 0 : i32
    %c0_i32_0 = arith.constant 0 : i32
    %c0_i32_1 = arith.constant 0 : i32
    return %c0_i32, %c0_i32_0 : i32, i32
  }
  func.func @transform_5(%arg0: i32) -> (i32, i32) {
    %c0_i32 = arith.constant 0 : i32
    %c0_i32_0 = arith.constant 0 : i32
    %c0_i32_1 = arith.constant 0 : i32
    return %c0_i32, %c0_i32_0 : i32, i32
  }
  func.func @transform_6(%arg0: i32) -> (i32, i32) {
    %c0_i32 = arith.constant 0 : i32
    %c0_i32_0 = arith.constant 0 : i32
    %c0_i32_1 = arith.constant 0 : i32
    return %c0_i32, %c0_i32_0 : i32, i32
  }
  func.func @transform_7(%arg0: i32) -> (i32, i32) {
    %c0_i32 = arith.constant 0 : i32
    %c0_i32_0 = arith.constant 0 : i32
    return %arg0, %c0_i32 : i32, i32
  }
}

</mosaic_0001>

<bundles_post_ra>
// kernel: tpu_custom_call.1
= control target key start
LH: loop header
LB: loop body
LE: loop exit
PB: predicated region body
PF: predicated region fallthrough
CT: control target
= control target key end

     0   :  { %s2195_s0 = inlined_call_operand.hbm [shape: bf16[32,256], index: 0, kind: input, shape index: {}]   ;;  %s2196_s1 = inlined_call_operand.hbm [shape: bf16[32,256], index: 1, kind: input, shape index: {}]   ;;  %s2197_s2 = inlined_call_operand.hbm [shape: bf16[256,128], index: 2, kind: input, shape index: {}]   ;;  %s2198_s3 = inlined_call_operand.hbm [shape: bf16[256,128], index: 3, kind: input, shape index: {}]   ;;  %s2199_s4 = inlined_call_operand.hbm [shape: bf16[128,128], index: 4, kind: input, shape index: {}]   ;;  %s2200_s5 = inlined_call_operand.vmem [shape: f32[16,128], index: 5, kind: input, shape index: {}]   ;;  %s2201_s6 = inlined_call_operand.<no memory space> [shape: f32[1,1], index: 6, kind: input, shape index: {}]   ;;  %s2202_s7 = inlined_call_operand.hbm [shape: f32[32,128], index: 7, kind: output, shape index: {}]  }
   0x1   :  { %2206 = sst [smem:[#allocation18_spill]] %s2195_s0 }
   0x2   :  { %2207 = sst [smem:[#allocation19_spill]] %s2197_s2 }
   0x3   :  { %2208 = sst [smem:[#allocation20_spill]] %s2198_s3 }
   0x4   :  { %12 = sst [smem:[#allocation2]] %s2201_s6 }
   0x5   :  { %13 = vsyncpa [#allocation4], 0 }
   0x6   :  { %15 = vsyncpa [#allocation4 + $0x1], 0 }
   0x7   :  { %16 = vsyncpa [#allocation7], 0 }
   0x8   :  { %18 = vsyncpa [#allocation7 + $0x1], 0 }
   0x9   :  { %19 = vsyncpa [#allocation10], 0 }
   0xa   :  { %20 = vsyncpa [#allocation5], 0 }
   0xb   :  { %22 = vsyncpa [#allocation5 + $0x1], 0  ;;  %s1805_s26 = smov 0   ;;  %s1807_s27 = smov 0  }
   0xc   :  { %s1809_s28 = smov 0   ;;  %s1811_s29 = smov 0  }
   0xd LB: > { %s1826_s6 = sadd.s32 4294967295, %s1746_s29   ;;  %s1206_s30 = sadd.s32 4294967294, %s1746_s29   ;;  %s1746_s29 = sphi %s1811_s29, %s2231_s29   ;;  %s1742_s28 = sphi %s1809_s28, %s2230_s28   ;;  %s1738_s27 = sphi %s1807_s27, %s2229_s27   ;;  %s1734_s26 = sphi %s1805_s26, %s2228_s26  }
   0xe   : > { %p48_p0 = scmp.ne.s32.totalorder %s1738_s27, %s1734_s26  ;;  %p2203_p1 = scmp.eq.s32.totalorder %s1826_s6, 0 }
   0xf   : > { %p209_p3 = scmp.eq.s32.totalorder %s1206_s30, 1  ;;  %p1207_p5 = scmp.ge.s32.totalorder %s1746_s29, 1 }
  0x10   : > { %p1835_p4 = por %p2203_p1, %p48_p0  ;;  %p216_p7 = scmp.lt.s32.totalorder %s1746_s29, 3 }
  0x11   : > { %p1840_p6 = por %p209_p3, %p48_p0  ;;  %s1748_s11 = smov [#allocation8]  }
  0x12   : > { %s2209_s8 = scalar_select %p1835_p4, 1, 0 }
  0x13   : > { %s2210_s9 = scalar_select %p1840_p6, 1, 0 }
  0x14   : > { %p1845_p8 = pnand %p1207_p5, %p216_p7  ;;  %s228_s12 = sshll.u32 %s1748_s11, 4  ;;  %s1849_s12 = int_to_ptr.vmem [resolvable:$true] %s228_s12 }
  0x15   : > { %s1749_s14 = smov [#allocation9]   ;;  %s1750_s16 = smov [#allocation11]  }
  0x16   : > { %s2211_s10 = scalar_select %p1845_p8, 1, 0 }
  0x17   : > { %p1381_p9 = pneg %p1845_p8  ;;  %s241_s15 = sshll.u32 %s1749_s14, 4  ;;  %s1860_s15 = int_to_ptr.vmem [resolvable:$true] %s241_s15 }
  0x18   : > { %s1862_s17 = sshll.u32 %s1750_s16, 4  ;;  %s2213_s2 = sld [smem:[#allocation19_spill]]  ;;  %s255_s17 = int_to_ptr.vmem [resolvable:$true] %s1862_s17 }
  0x19   : > { %p1856_p11 = pnand %p1381_p9, %p2203_p1 }
  0x1b   : > { %p1872_p13 = pneg %p1856_p11 }
  0x1e   : > { %s1524_s20 = scalar_lea.hbm %s2213_s2, 2048 }
  0x1f   : > { %p1525_p12 = scmp.ne.s32.totalorder %s2213_s2, %s1524_s20  ;;  %p1531_p5 = scmp.lt.u32.totalorder %s1524_s20, %s2213_s2 }
  0x21   : > { %p1527_p0 = pnand %p1872_p13, %p1525_p12 }
  0x23   : > { %p1528_p3 = pneg %p1527_p0 }
  0x25   : > { %p1533_p7 = pnand %p1531_p5, %p1528_p3 }
  0x27   : > { %1536 = shalt.err (!%p1533_p7)
}
  0x28   : > { %s1537_s30 = scalar_lea.vmem %s1849_s12, 2048  ;;  %p1545_p2 = scmp.lt.s32.totalorder %s1849_s12, %s1849_s12 }
  0x29   : > { %p1538_p9 = scmp.ne.s32.totalorder %s1849_s12, %s1537_s30  ;;  %p1546_p6 = scmp.lt.s32.totalorder %s1537_s30, %s1537_s30 }
  0x2b   : > { %p1540_p10 = pnand %p1538_p9, %p1872_p13  ;;  %p1547_p12 = por %p1546_p6, %p1545_p2 }
  0x2d   : > { %p1541_p1 = pneg %p1540_p10 }
  0x2f   : > { %p1548_p0 = pnand %p1547_p12, %p1541_p1 }
  0x31   : > { %1551 = shalt.err (!%p1548_p0)
}
  0x32   : > { %s1751_s11 = smov 64   ;;  %s1752_s14 = smov 4  }
  0x33   : > { %1384 = dma.hbm_to_vmem [thread:$0]  (!%p1856_p11), %s2213_s2, 2048, %s1849_s12, [#allocation7], %s1751_s11, %s1751_s11, %s1752_s14  }
  0x34   : > { %s2215_s3 = sld [smem:[#allocation20_spill]] }
  0x3a   : > { %s1552_s21 = scalar_lea.hbm %s2215_s3, 2048 }
  0x3b   : > { %p1553_p1 = scmp.ne.s32.totalorder %s2215_s3, %s1552_s21  ;;  %p1559_p10 = scmp.lt.u32.totalorder %s1552_s21, %s2215_s3 }
  0x3d   : > { %p1555_p2 = pnand %p1553_p1, %p1872_p13 }
  0x3f   : > { %p1556_p6 = pneg %p1555_p2 }
  0x41   : > { %p1561_p3 = pnand %p1559_p10, %p1556_p6 }
  0x43   : > { %1564 = shalt.err (!%p1561_p3)
}
  0x44   : > { %s1565_s12 = scalar_lea.vmem %s1860_s15, 2048  ;;  %p1573_p12 = scmp.lt.s32.totalorder %s1860_s15, %s1860_s15 }
  0x45   : > { %p1566_p5 = scmp.ne.s32.totalorder %s1860_s15, %s1565_s12  ;;  %p1574_p0 = scmp.lt.s32.totalorder %s1565_s12, %s1565_s12 }
  0x47   : > { %p1568_p7 = pnand %p1566_p5, %p1872_p13  ;;  %p1575_p1 = por %p1574_p0, %p1573_p12 }
  0x49   : > { %p1569_p9 = pneg %p1568_p7 }
  0x4b   : > { %p1576_p2 = pnand %p1575_p1, %p1569_p9 }
  0x4d   : > { %1579 = shalt.err (!%p1576_p2)
}
  0x4e   : > { %1387 = dma.hbm_to_vmem [thread:$0]  (!%p1856_p11), %s2215_s3, 2048, %s1860_s15, [#allocation10], %s1751_s11, %s1751_s11, %s1752_s14  }
  0x4f   : > { %s1580_s21 = scalar_lea.hbm %s2199_s4, 1024 }
  0x50   : > { %p1581_p6 = scmp.ne.s32.totalorder %s2199_s4, %s1580_s21  ;;  %p1587_p5 = scmp.lt.u32.totalorder %s1580_s21, %s2199_s4 }
  0x52   : > { %p1583_p10 = pnand %p1581_p6, %p1872_p13 }
  0x54   : > { %p1584_p3 = pneg %p1583_p10 }
  0x56   : > { %p1589_p7 = pnand %p1587_p5, %p1584_p3 }
  0x58   : > { %1592 = shalt.err (!%p1589_p7)
}
  0x59   : > { %s1593_s12 = scalar_lea.vmem %s255_s17, 1024  ;;  %p1601_p1 = scmp.lt.s32.totalorder %s255_s17, %s255_s17 }
  0x5a   : > { %p1594_p9 = scmp.ne.s32.totalorder %s255_s17, %s1593_s12  ;;  %p1602_p2 = scmp.lt.s32.totalorder %s1593_s12, %s1593_s12 }
  0x5c   : > { %p1596_p12 = pnand %p1594_p9, %p1872_p13  ;;  %p1603_p4 = por %p1602_p2, %p1601_p1 }
  0x5e   : > { %p1597_p0 = pneg %p1596_p12 }
  0x60   : > { %p1604_p8 = pnand %p1603_p4, %p1597_p0 }
  0x62   : > { %1607 = shalt.err (!%p1604_p8)
}
  0x63   : > { %1390 = dma.hbm_to_vmem [thread:$0]  (!%p1856_p11), %s2199_s4, 1024, %s255_s17, [#allocation10], %s1751_s11, %s1751_s11, %s1752_s14  }
  0x64   : > { %s1945_s13 = sadd.s32 1, %s1746_s29   ;;  %s35_s18 = sadd.s32 1, %s1742_s28 }
  0x65   : > { %s32_s23 = ssub.s32 %s1746_s29, %s1945_s13  ;;  %p42_p8 = scmp.ne.s32.totalorder %s1742_s28, %s1738_s27 }
  0x66   : > { %p33_p4 = scmp.eq.s32.totalorder %s32_s23, 0  ;;  %p43_p13 = scmp.eq.s32.totalorder %s1746_s29, 0 }
  0x67   : > { %p1405_p6 = scmp.lt.s32.totalorder %s1746_s29, 2  ;;  %p2216_p3 = scmp.eq.s32.totalorder %s1826_s6, 1 }
  0x68   : > { %s1955_s19 = scalar_select %p33_p4, %s1742_s28, %s35_s18  }
  0x69   : > { %p44_p10 = por %p43_p13, %p42_p8  ;;  %p1959_p5 = por %p2216_p3, %p42_p8 }
  0x6a   : > { %s274_s21 = sand.u32 1, %s1742_s28   ;;  %s1286_s22 = sshll.u32 %s1746_s29, 8 }
  0x6b   : > { %s1965_s17 = sshll.u32 %s274_s21, 4  ;;  %s2218_s0 = sld [smem:[#allocation18_spill]] }
  0x6c   : > { %s278_s25 = scalar_lea.vmem [#allocation3], %s1965_s17  ;;  %p1975_p11 = pnand %p1405_p6, %p44_p10 }
  0x6d   : > { %s286_s30 = sshll.u32 %s278_s25, 4  ;;  %s1981_s15 = scalar_lea.sflag [#allocation4], %s274_s21  ;;  %s1979_s30 = int_to_ptr.vmem [resolvable:$true] %s286_s30 }
  0x6e   : > { %p1610_p9 = pneg %p1975_p11 }
  0x71   : > { %s1972_s24 = scalar_lea.hbm %s2218_s0, %s1286_s22  ;;  %s1613_s11 = scalar_lea.hbm %s2218_s0, 512 }
  0x72   : > { %s1608_s16 = scalar_lea.hbm %s1972_s24, 256  ;;  %p1614_p1 = scmp.lt.u32.totalorder %s1972_s24, %s2218_s0 }
  0x73   : > { %p1609_p7 = scmp.ne.s32.totalorder %s1972_s24, %s1608_s16  ;;  %p1615_p2 = scmp.lt.u32.totalorder %s1613_s11, %s1608_s16 }
  0x74   : > { %p1617_p8 = scmp.lt.u32.totalorder %s1608_s16, %s1972_s24 }
  0x75   : > { %p1611_p12 = pnand %p1610_p9, %p1609_p7  ;;  %p1616_p4 = por %p1615_p2, %p1614_p1 }
  0x77   : > { %p1612_p0 = pneg %p1611_p12  ;;  %p1618_p13 = por %p1617_p8, %p1616_p4 }
  0x79   : > { %p1619_p6 = pnand %p1618_p13, %p1612_p0 }
  0x7b   : > { %1622 = shalt.err (!%p1619_p6)
}
  0x7c   : > { %s1623_s21 = scalar_lea.vmem %s1979_s30, 256  ;;  %s1753_s23 = smov [#allocation3]  }
  0x7d   : > { %p1624_p10 = scmp.ne.s32.totalorder %s1979_s30, %s1623_s21  ;;  %s1628_s18 = sshll.u32 %s1753_s23, 4  ;;  %s1629_s18 = int_to_ptr.vmem [resolvable:$false] %s1628_s18 }
  0x7e   : > { %s1630_s14 = scalar_lea.vmem %s1629_s18, 512  ;;  %p1631_p12 = scmp.lt.s32.totalorder %s1979_s30, %s1629_s18 }
  0x7f   : > { %p1626_p3 = pnand %p1624_p10, %p1610_p9  ;;  %p1632_p1 = scmp.lt.s32.totalorder %s1630_s14, %s1623_s21 }
  0x81   : > { %p1627_p7 = pneg %p1626_p3  ;;  %p1633_p2 = por %p1632_p1, %p1631_p12 }
  0x83   : > { %p1634_p4 = pnand %p1633_p2, %p1627_p7 }
  0x85   : > { %1637 = shalt.err (!%p1634_p4)
}
  0x86   : > { %s1754_s16 = smov 128   ;;  %s1755_s11 = smov 8  }
  0x87   : > { %1394 = dma.hbm_to_vmem [thread:$0]  (!%p1975_p11), %s1972_s24, 256, %s1979_s30, %s1981_s15, %s1754_s16, %s1754_s16, %s1755_s11  }
  0x88   : > { %s2017_s23 = scalar_lea.hbm %s2196_s1, %s1286_s22  ;;  %s300_s18 = scalar_lea.vmem [#allocation6], %s1965_s17 }
  0x89   : > { %s308_s14 = sshll.u32 %s300_s18, 4  ;;  %s296_s0 = sand.u32 1, %s1746_s29   ;;  %s2021_s14 = int_to_ptr.vmem [resolvable:$true] %s308_s14 }
  0x8a   : > { %s2023_s2 = scalar_lea.sflag [#allocation7], %s296_s0  ;;  %s1638_s3 = scalar_lea.hbm %s2017_s23, 256 }
  0x8b   : > { %p1639_p0 = scmp.ne.s32.totalorder %s2017_s23, %s1638_s3  ;;  %s1643_s30 = scalar_lea.hbm %s2196_s1, 512 }
  0x8c   : > { %p1644_p6 = scmp.lt.u32.totalorder %s2017_s23, %s2196_s1  ;;  %p1645_p10 = scmp.lt.u32.totalorder %s1643_s30, %s1638_s3 }
  0x8d   : > { %p1641_p8 = pnand %p1639_p0, %p1610_p9  ;;  %p1647_p7 = scmp.lt.u32.totalorder %s1638_s3, %s2017_s23 }
  0x8e   : > { %p1646_p3 = por %p1645_p10, %p1644_p6 }
  0x8f   : > { %p1642_p13 = pneg %p1641_p8 }
  0x90   : > { %p1648_p12 = por %p1647_p7, %p1646_p3 }
  0x92   : > { %p1649_p1 = pnand %p1648_p12, %p1642_p13 }
  0x94   : > { %1652 = shalt.err (!%p1649_p1)
}
  0x95   : > { %s1653_s0 = scalar_lea.vmem %s2021_s14, 256  ;;  %s1756_s17 = smov [#allocation6]  }
  0x96   : > { %p1654_p2 = scmp.ne.s32.totalorder %s2021_s14, %s1653_s0  ;;  %s1658_s21 = sshll.u32 %s1756_s17, 4  ;;  %s1659_s21 = int_to_ptr.vmem [resolvable:$false] %s1658_s21 }
  0x97   : > { %s1660_s18 = scalar_lea.vmem %s1659_s21, 512  ;;  %p1661_p8 = scmp.lt.s32.totalorder %s2021_s14, %s1659_s21 }
  0x98   : > { %p1656_p4 = pnand %p1654_p2, %p1610_p9  ;;  %p1662_p6 = scmp.lt.s32.totalorder %s1660_s18, %s1653_s0 }
  0x9a   : > { %p1657_p0 = pneg %p1656_p4  ;;  %p1663_p10 = por %p1662_p6, %p1661_p8 }
  0x9c   : > { %p1664_p3 = pnand %p1663_p10, %p1657_p0 }
  0x9e   : > { %1667 = shalt.err (!%p1664_p3)
}
  0x9f   : > { %1397 = dma.hbm_to_vmem [thread:$0]  (!%p1975_p11), %s2017_s23, 256, %s2021_s14, %s2023_s2, %s1754_s16, %s1754_s16, %s1755_s11  }
  0xa0   : > { %p2220_p9 = scmp.ne.s32.totalorder %s2211_s10, 0 }
  0xa1   : > { %s2055_s3 = sand.u32 (!%p2220_p9), 1, %s1738_s27   ;;  %p2221_p13 = scmp.ne.s32.totalorder (!%p2220_p9), %s2209_s8, 0 }
  0xa2   : > { %320 = sbr.rel (%p2220_p9) target bundleno = 1326 (0x52e), region = 48  ;;  %s2058_s24 = sshll.u32 (!%p2220_p9), %s2055_s3, 4 }
  0xa3   : > { %s323_s12 = scalar_lea.sflag (!%p2220_p9), [#allocation4], %s2055_s3  ;;  %s326_s22 = scalar_lea.vmem (!%p2220_p9), [#allocation3], %s2058_s24 }
  0xa9   : > { %1713 = dma.done.wait (%p2221_p13), %s323_s12, 256  }
  0xaa   : > { %1715 = vsyncadd (%p2221_p13), %s323_s12, 4294967040  ;;  %s331_s2 = sand.u32 1, %s1826_s6   ;;  %s335_s16 = scalar_lea.vmem [#allocation6], %s2058_s24 }
  0xab   : > { %s332_s10 = scalar_lea.sflag [#allocation7], %s331_s2 }
  0xac   : > { %1717 = dma.done.wait (%p2221_p13), %s332_s10, 256  }
  0xad   : > { %1719 = vsyncadd (%p2221_p13), %s332_s10, 4294967040  ;;  %p2222_p11 = scmp.eq.s32.totalorder %s1826_s6, 0 }
  0xaf   : > { %1721 = dma.done.wait (%p2222_p11), [#allocation7], 2048   ;;  %p2223_p7 = pmov %p2222_p11 }
  0xb1   : > { %1723 = vsyncadd (%p2223_p7), [#allocation7], 4294965248  ;;  %p2224_p12 = pmov %p2223_p7 }
  0xb2   : > { %p2225_p1 = pmov %p2223_p7 }
  0xb3   : > { %1725 = dma.done.wait (%p2224_p12), [#allocation10], 3072  }
  0xb4   : > { %1727 = vsyncadd (%p2225_p1), [#allocation10], 4294964224  ;;  %v387_v0 = vld [vmem:[%s326_s22] sm:$0xff]  ;;  %v2080_v1 = vld [vmem:[%s326_s22 + $0x8] sm:$0xff]  ;;  %vm1758_vm0 = vmmov 0   ;;  %s894_s17 = sld [smem:[#allocation2]] }
  0xb5   : > { %v389_v2 = vunpack.c.l.bf16 %v387_v0  ;;  %v390_v3 = vunpack.c.h.bf16 %v387_v0  ;;  %v391_v4 = vunpack.c.l.bf16 %v2080_v1  ;;  %v392_v5 = vunpack.c.h.bf16 %v2080_v1  ;;  %v1453_v6 = vld [vmem:[#allocation9 + $0x40] sm:$0xff]   ;;  %v1455_v9 = vld [vmem:[#allocation9 + $0x48] sm:$0xff]   ;;  %v1457_v12 = vld [vmem:[#allocation9 + $0x50] sm:$0xff]   ;;  %s1289_s14 = sshll.u32 %s1826_s6, 8  ;;  %s382_s30 = scalar_lea.vmem [#allocation12], %s2058_s24 }
  0xb6   : > { %v1454_v7 = vld [vmem:[#allocation9] sm:$0xff]   ;;  %1312 = vmatprep.subr.bf16.mxu1 %v1453_v6  ;;  %v1456_v10 = vld [vmem:[#allocation9 + $0x8] sm:$0xff]   ;;  %v1458_v13 = vld [vmem:[#allocation9 + $0x10] sm:$0xff]   ;;  %s1082_s15 = sshll.u32 %s382_s30, 4  ;;  %s1069_s21 = scalar_lea.sflag [#allocation5], %s2055_s3  ;;  %s2151_s15 = int_to_ptr.vmem [resolvable:$true] %s1082_s15 }
  0xb7   : > { %v404_v8 = vadd.f32 %v390_v3, %v389_v2  ;;  %1313 = vmatpush3.bf16.msra.mxu1 %v1454_v7  ;;  %v407_v11 = vadd.f32 %v392_v5, %v391_v4  ;;  %v1459_v14 = vld [vmem:[#allocation9 + $0x58] sm:$0xff]   ;;  %v1461_v16 = vld [vmem:[#allocation9 + $0x60] sm:$0xff]   ;;  %v1463_v18 = vld [vmem:[#allocation9 + $0x68] sm:$0xff]   ;;  %s1668_s18 = scalar_lea.vmem %s2151_s15, 256  ;;  %s1759_s6 = smov [#allocation12]  }
  0xb8   : > { %1314 = vmatprep.subr.bf16.mxu1 %v1455_v9  ;;  %v1460_v15 = vld [vmem:[#allocation9 + $0x18] sm:$0xff]   ;;  %v1462_v17 = vld [vmem:[#allocation9 + $0x20] sm:$0xff]   ;;  %v1464_v19 = vld [vmem:[#allocation9 + $0x28] sm:$0xff]   ;;  %p1669_p2 = scmp.ne.s32.totalorder %s2151_s15, %s1668_s18  ;;  %s1672_s24 = sshll.u32 %s1759_s6, 4  ;;  %s1673_s24 = int_to_ptr.vmem [resolvable:$false] %s1672_s24 }
  0xb9   : > { %405 = vadd.xlane.f32.xlu0 %v404_v8  ;;  %v1465_v20 = vld [vmem:[#allocation9 + $0x70] sm:$0xff]   ;;  %v1467_v23 = vld [vmem:[#allocation9 + $0x78] sm:$0xff]   ;;  %v1472_v26 = vld [vmem:[#allocation8 + $0x40] sm:$0xff]   ;;  %s1674_s12 = scalar_lea.vmem %s1673_s24, 512  ;;  %p1675_p8 = scmp.lt.s32.totalorder %s2151_s15, %s1673_s24 }
  0xba   : > { %v1471_v21 = vld [vmem:[%s335_s16 + $0x4] ss:$8 sps:$4 sm:$0xff]   ;;  %v1469_v25 = vld [vmem:[%s335_s16] ss:$8 sps:$4 sm:$0xff]   ;;  %1290 = vmatprep.subr.bf16.mxu0 %v1472_v26  ;;  %p1670_p4 = pnand %p1669_p2, %p1959_p5  ;;  %p1676_p6 = scmp.lt.s32.totalorder %s1674_s12, %s1668_s18 }
  0xbb   : > { %1315 = vmatpush3.bf16.msra.mxu1 %v1456_v10  ;;  %v1466_v22 = vld [vmem:[#allocation9 + $0x30] sm:$0xff]   ;;  %845 = vmatprep.mubr.bf16.mxu1 %v1471_v21  ;;  %v1468_v24 = vld [vmem:[#allocation9 + $0x38] sm:$0xff]   ;;  %v1473_v27 = vld [vmem:[#allocation8] sm:$0xff]  }
  0xbc   : > { %1316 = vmatprep.subr.bf16.mxu1 %v1457_v12  ;;  %v1474_v28 = vld [vmem:[#allocation8 + $0x48] sm:$0xff]   ;;  %1291 = vmatpush3.bf16.msra.mxu0 %v1473_v27  ;;  %v1476_v44 = vld [vmem:[#allocation8 + $0x50] sm:$0xff]   ;;  %v1478_v46 = vld [vmem:[#allocation8 + $0x58] sm:$0xff]   ;;  %p1671_p0 = pneg %p1670_p4  ;;  %p1677_p10 = por %p1676_p6, %p1675_p8 }
  0xbd   : > { %408 = vadd.xlane.f32.xlu0 %v407_v11  ;;  %v1475_v29 = vld [vmem:[#allocation8 + $0x8] sm:$0xff]   ;;  %1292 = vmatprep.subr.bf16.mxu0 %v1474_v28  ;;  %v1477_v45 = vld [vmem:[#allocation8 + $0x10] sm:$0xff]   ;;  %v1479_v47 = vld [vmem:[#allocation8 + $0x18] sm:$0xff]  }
  0xbe   : > { %v1480_v48 = vld [vmem:[#allocation8 + $0x60] sm:$0xff]   ;;  %v1482_v50 = vld [vmem:[#allocation8 + $0x68] sm:$0xff]   ;;  %v1484_v52 = vld [vmem:[#allocation8 + $0x70] sm:$0xff]   ;;  %p1678_p3 = pnand %p1677_p10, %p1671_p0 }
  0xbf   : > { %1317 = vmatpush3.bf16.msra.mxu1 %v1458_v13  ;;  %v1481_v49 = vld [vmem:[#allocation8 + $0x20] sm:$0xff]   ;;  %v1483_v51 = vld [vmem:[#allocation8 + $0x28] sm:$0xff]   ;;  %v1485_v53 = vld [vmem:[#allocation8 + $0x30] sm:$0xff]  }
  0xc0   : > { %1318 = vmatprep.subr.bf16.mxu1 %v1459_v14  ;;  %1293 = vmatpush3.bf16.msra.mxu0 %v1475_v29  ;;  %v1486_v54 = vld [vmem:[#allocation8 + $0x78] sm:$0xff]   ;;  %v1246_v57 = vld [vmem:[%s2200_s5 + $0x3] ss:$0 sm:$0xff] }
  0xc1   : > { %1294 = vmatprep.subr.bf16.mxu0 %v1476_v44  ;;  %v1487_v55 = vld [vmem:[#allocation8 + $0x38] sm:$0xff]  }
  0xc3   : > { %1319 = vmatpush3.bf16.msra.mxu1 %v1460_v15 }
  0xc4   : > { %1320 = vmatprep.subr.bf16.mxu1 %v1461_v16  ;;  %1295 = vmatpush3.bf16.msra.mxu0 %v1477_v45 }
  0xc5   : > { %1296 = vmatprep.subr.bf16.mxu0 %v1478_v46  ;;  %v1488_v46 = vld [vmem:[#allocation11] sm:$0xff]  }
  0xc7   : > { %1321 = vmatpush3.bf16.msra.mxu1 %v1462_v17 }
  0xc8   : > { %1322 = vmatprep.subr.bf16.mxu1 %v1463_v18  ;;  %1297 = vmatpush3.bf16.msra.mxu0 %v1479_v47  ;;  %v1227_v18 = vld [vmem:[%s2200_s5] ss:$0 sm:$0xff]  ;;  %v1757_v47 = vmov 0.0  }
  0xc9   : > { %1298 = vmatprep.subr.bf16.mxu0 %v1480_v48  ;;  %v1489_v48 = vld [vmem:[#allocation11 + $0x8] sm:$0xff]  }
  0xcb   : > { %1323 = vmatpush3.bf16.msra.mxu1 %v1464_v19 }
  0xcc   : > { %1324 = vmatprep.subr.bf16.mxu1 %v1465_v20  ;;  %1299 = vmatpush3.bf16.msra.mxu0 %v1481_v49  ;;  %v1490_v49 = vld [vmem:[#allocation11 + $0x10] sm:$0xff]  }
  0xcd   : > { %1300 = vmatprep.subr.bf16.mxu0 %v1482_v50  ;;  %v1491_v50 = vld [vmem:[#allocation11 + $0x18] sm:$0xff]  }
  0xcf   : > { %1325 = vmatpush3.bf16.msra.mxu1 %v1466_v22 }
  0xd0   : > { %1326 = vmatprep.subr.bf16.mxu1 %v1467_v23  ;;  %1301 = vmatpush3.bf16.msra.mxu0 %v1483_v51  ;;  %v1492_v51 = vld [vmem:[#allocation11 + $0x20] sm:$0xff]  }
  0xd1   : > { %1302 = vmatprep.subr.bf16.mxu0 %v1484_v52  ;;  %v1493_v52 = vld [vmem:[#allocation11 + $0x28] sm:$0xff]  }
  0xd3   : > { %1327 = vmatpush3.bf16.msra.mxu1 %v1468_v24 }
  0xd4   : > { %1303 = vmatpush3.bf16.msra.mxu0 %v1485_v53  ;;  %v1494_v53 = vld [vmem:[#allocation11 + $0x30] sm:$0xff]  }
  0xd5   : > { %1304 = vmatprep.subr.bf16.mxu0 %v1486_v54  ;;  %v1495_v54 = vld [vmem:[#allocation11 + $0x38] sm:$0xff]  }
  0xd6   : > { %846 = vmatmul.mubr.bf16.vlgmr.msra.gmra.mrb[0].mxu1 %v1469_v25 }
  0xd8   : > { %1305 = vmatpush3.bf16.msra.mxu0 %v1487_v55 }
  0xd9   : > { %1343 = vmatprep.subr.bf16.mxu0 %v1757_v47 }
 0x146   : > { %v406_v30 = vpop.xlane.xlu0 %405 }
 0x147   : > { %v411_v31 = vmul.f32 0.00390625, %v406_v30 }
 0x149   : > { %v2088_v32 = vsub.f32 %v389_v2, %v411_v31  ;;  %v414_v33 = vsub.f32 %v390_v3, %v411_v31 }
 0x14a   : > { %v409_v34 = vpop.xlane.xlu0 %408 }
 0x14b   : > { %v412_v35 = vmul.f32 0.00390625, %v409_v34  ;;  %v417_v36 = vmul.f32 %v2088_v32, %v2088_v32  ;;  %v418_v37 = vmul.f32 %v414_v33, %v414_v33 }
 0x14d   : > { %v415_v38 = vsub.f32 %v391_v4, %v412_v35  ;;  %v416_v39 = vsub.f32 %v392_v5, %v412_v35  ;;  %v421_v40 = vadd.f32 %v418_v37, %v417_v36 }
 0x14f   : > { %422 = vadd.xlane.f32.xlu1 %v421_v40  ;;  %v419_v41 = vmul.f32 %v415_v38, %v415_v38  ;;  %v420_v42 = vmul.f32 %v416_v39, %v416_v39 }
 0x151   : > { %v424_v43 = vadd.f32 %v420_v42, %v419_v41 }
 0x153   : > { %425 = vadd.xlane.f32.xlu1 %v424_v43 }
 0x1a9   : > { %v1328_v56 = vpop.f32.mrb[0].mxu1 }
 0x1aa   : > { %v1329_v58 = vpop.f32.mrb[1].mxu1 }
 0x1ab   : > { %v1330_v59 = vadd.f32 %v1329_v58, %v1328_v56  ;;  %v1331_v60 = vpop.f32.mrb[2].mxu1 }
 0x1ac   : > { %v1332_v61 = vpop.f32.mrb[3].mxu1 }
 0x1ad   : > { %v2095_v62 = vadd.f32 %v1330_v59, %v1246_v57  ;;  %v1333_v63 = vadd.f32 %v1332_v61, %v1331_v60 }
 0x1af   : > { %v2097_v0 = vadd.f32 %v1333_v63, %v1246_v57  ;;  %854 = vadd.xlane.f32.xlu0 %v2095_v62  ;;  %v860_v1 = vmul.f32 %v2095_v62, %v2095_v62 }
 0x1b1   : > { %856 = vadd.xlane.f32.xlu1 %v2097_v0  ;;  %v861_v2 = vmul.f32 %v2097_v0, %v2097_v0 }
 0x1b3   : > { %862 = vadd.xlane.f32.xlu0 %v860_v1 }
 0x1b5   : > { %864 = vadd.xlane.f32.xlu1 %v861_v2 }
 0x1dc   : > { %v423_v3 = vpop.xlane.xlu1 %422 }
 0x1dd   : > { %v427_v4 = vmul.f32 0.00390625, %v423_v3 }
 0x1df   : > { %v429_v5 = vadd.f32 1e-05, %v427_v4 }
 0x1e0   : > { %v426_v6 = vpop.xlane.xlu1 %425 }
 0x1e1   : > { %v428_v7 = vmul.f32 0.00390625, %v426_v6  ;;  %1496 = vrsqrt.f32 %v429_v5 }
 0x1e3   : > { %v430_v8 = vadd.f32 1e-05, %v428_v7 }
 0x1e5   : > { %1498 = vrsqrt.f32 %v430_v8 }
 0x1eb   : > { %v1497_v9 = vpop.eup %1496 }
 0x1ec   : > { %v434_v11 = vmul.f32 %v1497_v9, %v414_v33  ;;  %v433_v13 = vmul.f32 %v1497_v9, %v2088_v32 }
 0x1ef   : > { %v1499_v10 = vpop.eup %1498 }
 0x1f0   : > { %v436_v12 = vmul.f32 %v1499_v10, %v416_v39  ;;  %v435_v14 = vmul.f32 %v1499_v10, %v415_v38 }
 0x1f2   : > { %v438_v15 = vpack.c.bf16 %v436_v12, %v434_v11  ;;  %v437_v16 = vpack.c.bf16 %v435_v14, %v433_v13  ;;  %v1265_v14 = vld [vmem:[%s2200_s5 + $0x4] ss:$0 sm:$0xff] }
 0x1f4   : > { %603 = vmatprep.mubr.bf16.mxu0 %v438_v15 }
 0x1f5   : > { %604 = vmatmul.mubr.bf16.vlgmr.msra.gmra.mrb[0].mxu0 %v437_v16 }
 0x1f6   : > { %1344 = vmatpush3.bf16.msra.mxu0 %v1488_v46  ;;  %1359 = vmatprep.mubr.msk.bf16.mxu0 %vm1758_vm0, %v1757_v47 }
 0x1f7   : > { %1345 = vmatprep.subr.bf16.mxu0 %v1757_v47 }
 0x1fa   : > { %1346 = vmatpush3.bf16.msra.mxu0 %v1489_v48  ;;  %v907_v48 = vstv %s894_s17  ;;  %s2149_s17 = scalar_lea.hbm %s2202_s7, %s1289_s14 }
 0x1fb   : > { %1347 = vmatprep.subr.bf16.mxu0 %v1757_v47 }
 0x1fe   : > { %1348 = vmatpush3.bf16.msra.mxu0 %v1490_v49 }
 0x1ff   : > { %1349 = vmatprep.subr.bf16.mxu0 %v1757_v47 }
 0x202   : > { %1350 = vmatpush3.bf16.msra.mxu0 %v1491_v50 }
 0x203   : > { %1351 = vmatprep.subr.bf16.mxu0 %v1757_v47 }
 0x206   : > { %1352 = vmatpush3.bf16.msra.mxu0 %v1492_v51 }
 0x207   : > { %1353 = vmatprep.subr.bf16.mxu0 %v1757_v47 }
 0x20a   : > { %1354 = vmatpush3.bf16.msra.mxu0 %v1493_v52  ;;  %v1245_v52 = vld [vmem:[%s2200_s5 + $0x2] ss:$0 sm:$0xff] }
 0x20b   : > { %1355 = vmatprep.subr.bf16.mxu0 %v1757_v47 }
 0x20e   : > { %1356 = vmatpush3.bf16.msra.mxu0 %v1494_v53 }
 0x20f   : > { %1357 = vmatprep.subr.bf16.mxu0 %v1757_v47  ;;  %v1244_v47 = vld [vmem:[%s2200_s5 + $0x1] ss:$0 sm:$0xff] }
 0x212   : > { %1358 = vmatpush3.bf16.msra.mxu0 %v1495_v54 }
 0x23c   : > { %v855_v55 = vpop.xlane.xlu0 %854 }
 0x23d   : > { %v858_v57 = vmul.f32 0.0078125, %v855_v55 }
 0x23e   : > { %v857_v56 = vpop.xlane.xlu1 %856 }
 0x23f   : > { %v859_v58 = vmul.f32 0.0078125, %v857_v56  ;;  %v868_v61 = vmul.f32 %v858_v57, %v858_v57  ;;  %v874_v9 = vsub.f32 %v2095_v62, %v858_v57 }
 0x240   : > { %v863_v59 = vpop.xlane.xlu0 %862 }
 0x241   : > { %v866_v63 = vmul.f32 0.0078125, %v863_v59  ;;  %v869_v1 = vmul.f32 %v859_v58, %v859_v58  ;;  %v875_v11 = vsub.f32 %v2097_v0, %v859_v58 }
 0x242   : > { %v865_v60 = vpop.xlane.xlu1 %864 }
 0x243   : > { %v867_v2 = vmul.f32 0.0078125, %v865_v60  ;;  %v870_v3 = vsub.f32 %v866_v63, %v868_v61 }
 0x245   : > { %v871_v4 = vsub.f32 %v867_v2, %v869_v1  ;;  %v872_v5 = vmax.f32 %v870_v3, 0.0 }
 0x247   : > { %v873_v6 = vmax.f32 %v871_v4, 0.0  ;;  %v876_v7 = vadd.f32 1e-05, %v872_v5 }
 0x249   : > { %v877_v8 = vadd.f32 1e-05, %v873_v6 }
 0x2c8   : > { %v1306_v17 = vpop.f32.mrb[0].mxu0 }
 0x2c9   : > { %v1307_v19 = vpop.f32.mrb[1].mxu0 }
 0x2ca   : > { %v1308_v20 = vadd.f32 %v1307_v19, %v1306_v17  ;;  %v1309_v21 = vpop.f32.mrb[2].mxu0  ;;  %v1266_v17 = vld [vmem:[%s2200_s5 + $0x5] ss:$0 sm:$0xff] }
 0x2cb   : > { %v1310_v22 = vpop.f32.mrb[3].mxu0 }
 0x2cc   : > { %v606_v23 = vadd.f32 %v1308_v20, %v1227_v18  ;;  %v1311_v24 = vadd.f32 %v1310_v22, %v1309_v21 }
 0x2ce   : > { %v612_v25 = vmul.f32 %v606_v23, %v606_v23  ;;  %v609_v26 = vadd.f32 %v1311_v24, %v1227_v18 }
 0x2d0   : > { %v614_v27 = vmul.f32 %v612_v25, %v606_v23  ;;  %v613_v28 = vmul.f32 %v609_v26, %v609_v26 }
 0x2d2   : > { %v616_v29 = vmul.f32 0.044715, %v614_v27  ;;  %v615_v30 = vmul.f32 %v613_v28, %v609_v26 }
 0x2d4   : > { %v617_v31 = vmul.f32 0.044715, %v615_v30  ;;  %v618_v32 = vadd.f32 %v616_v29, %v606_v23 }
 0x2d6   : > { %v620_v33 = vmul.f32 0.7978846, %v618_v32  ;;  %v619_v34 = vadd.f32 %v617_v31, %v609_v26 }
 0x2d8   : > { %1500 = vtanh.f32 %v620_v33  ;;  %v621_v35 = vmul.f32 0.7978846, %v619_v34 }
 0x2da   : > { %1502 = vtanh.f32 %v621_v35 }
 0x2db   : > { %1504 = vrsqrt.f32 %v876_v7 }
 0x2dc   : > { %1506 = vrsqrt.f32 %v877_v8 }
 0x2e2   : > { %v1501_v36 = vpop.eup %1500 }
 0x2e3   : > { %v624_v37 = vadd.f32 1.0, %v1501_v36 }
 0x2e4   : > { %v1503_v38 = vpop.eup %1502 }
 0x2e5   : > { %v626_v39 = vmul.f32 0.5, %v624_v37  ;;  %v625_v40 = vadd.f32 1.0, %v1503_v38  ;;  %v1505_v10 = vpop.eup %1504 }
 0x2e6   : > { %v1507_v12 = vpop.eup %1506  ;;  %v880_v13 = vmul.f32 %v1505_v10, %v874_v9 }
 0x2e7   : > { %v2109_v41 = vmul.f32 %v626_v39, %v606_v23  ;;  %v627_v42 = vmul.f32 0.5, %v625_v40  ;;  %v881_v15 = vmul.f32 %v1507_v12, %v875_v11 }
 0x2e8   : > { %v886_v16 = vmul.f32 %v1265_v14, %v880_v13 }
 0x2e9   : > { %630 = vadd.xlane.f32.xlu0 %v2109_v41  ;;  %v2112_v43 = vmul.f32 %v627_v42, %v609_v26  ;;  %v637_v44 = vmul.f32 %v2109_v41, %v2109_v41  ;;  %v887_v18 = vmul.f32 %v1265_v14, %v881_v15 }
 0x2ea   : > { %v892_v19 = vadd.f32 %v1266_v17, %v886_v16 }
 0x2eb   : > { %632 = vadd.xlane.f32.xlu1 %v2112_v43  ;;  %v638_v45 = vmul.f32 %v2112_v43, %v2112_v43  ;;  %v893_v20 = vadd.f32 %v1266_v17, %v887_v18 }
 0x2ec   : > { %v1267_v21 = vmul.f32 -1.442695, %v892_v19 }
 0x2ed   : > { %639 = vadd.xlane.f32.xlu0 %v637_v44  ;;  %v1268_v62 = vmul.f32 -1.442695, %v893_v20 }
 0x2ee   : > { %1508 = vpow2.f32 %v1267_v21 }
 0x2ef   : > { %641 = vadd.xlane.f32.xlu1 %v638_v45  ;;  %1510 = vpow2.f32 %v1268_v62 }
 0x2f8   : > { %v1509_v25 = vpop.eup %1508 }
 0x2f9   : > { %v1511_v27 = vpop.eup %1510  ;;  %v901_v31 = vadd.f32 1.0, %v1509_v25 }
 0x2fa   : > { %v902_v35 = vadd.f32 1.0, %v1511_v27 }
 0x2fb   : > { %1512 = vrcp.f32 %v901_v31 }
 0x2fc   : > { %1514 = vrcp.f32 %v902_v35 }
 0x305   : > { %v1513_v42 = vpop.eup %1512 }
 0x306   : > { %v1515_v44 = vpop.eup %1514  ;;  %v908_v55 = vmul.f32 %v1513_v42, %v907_v48 }
 0x307   : > { %v909_v56 = vmul.f32 %v1515_v44, %v907_v48 }
 0x308   : > { %v910_v59 = vadd.f32 1.0, %v908_v55 }
 0x309   : > { %v911_v60 = vadd.f32 1.0, %v909_v56 }
 0x376   : > { %v631_v0 = vpop.xlane.xlu0 %630 }
 0x377   : > { %v635_v22 = vmul.f32 0.0078125, %v631_v0 }
 0x378   : > { %v633_v23 = vpop.xlane.xlu1 %632 }
 0x379   : > { %v636_v24 = vmul.f32 0.0078125, %v633_v23  ;;  %v645_v28 = vmul.f32 %v635_v22, %v635_v22  ;;  %v651_v45 = vsub.f32 %v2109_v41, %v635_v22 }
 0x37a   : > { %v640_v26 = vpop.xlane.xlu0 %639 }
 0x37b   : > { %v643_v29 = vmul.f32 0.0078125, %v640_v26  ;;  %v646_v32 = vmul.f32 %v636_v24, %v636_v24  ;;  %v652_v49 = vsub.f32 %v2112_v43, %v636_v24  ;;  %v1269_v43 = vld [vmem:[%s2200_s5 + $0x6] ss:$0 sm:$0xff] }
 0x37c   : > { %v642_v30 = vpop.xlane.xlu1 %641 }
 0x37d   : > { %v647_v33 = vsub.f32 %v643_v29, %v645_v28  ;;  %v644_v34 = vmul.f32 0.0078125, %v642_v30  ;;  %v1278_v28 = vld [vmem:[%s2200_s5 + $0x7] ss:$0 sm:$0xff] }
 0x37f   : > { %v649_v36 = vmax.f32 %v647_v33, 0.0  ;;  %v648_v37 = vsub.f32 %v644_v34, %v646_v32  ;;  %v1279_v32 = vld [vmem:[%s2200_s5 + $0x8] ss:$0 sm:$0xff] }
 0x381   : > { %v653_v38 = vadd.f32 1e-05, %v649_v36  ;;  %v650_v39 = vmax.f32 %v648_v37, 0.0 }
 0x383   : > { %1516 = vrsqrt.f32 %v653_v38  ;;  %v654_v40 = vadd.f32 1e-05, %v650_v39 }
 0x385   : > { %1518 = vrsqrt.f32 %v654_v40 }
 0x38d   : > { %v1517_v46 = vpop.eup %1516 }
 0x38e   : > { %v657_v50 = vmul.f32 %v1517_v46, %v651_v45 }
 0x38f   : > { %v1519_v51 = vpop.eup %1518 }
 0x390   : > { %v658_v53 = vmul.f32 %v1519_v51, %v652_v49  ;;  %v663_v54 = vmul.f32 %v1244_v47, %v657_v50 }
 0x392   : > { %v664_v57 = vmul.f32 %v1244_v47, %v658_v53  ;;  %v669_v41 = vadd.f32 %v1245_v52, %v663_v54 }
 0x394   : > { %v670_v58 = vadd.f32 %v1245_v52, %v664_v57  ;;  %v912_v61 = vmul.f32 %v910_v59, %v669_v41 }
 0x396   : > { %v913_v63 = vmul.f32 %v911_v60, %v670_v58 }
 0x398   : > { %v914_v1 = vpack.c.bf16 %v913_v63, %v912_v61 }
 0x39a   : > { %1360 = vmatmul.mubr.bf16.vlgmr.msra.gmra.mrb[4].mxu0 %v914_v1 }
 0x46d   : > { %v1017_v2 = vpop.f32.mrb[4].mxu0 }
 0x46e   : > { %v1018_v3 = vadd.f32 %v1269_v43, %v1017_v2  ;;  %v1361_v4 = vpop.f32.mrb[5].mxu0 }
 0x46f   : > { %v1020_v5 = vpop.f32.mrb[6].mxu0 }
 0x470   : > { %v1024_v6 = vadd.f32 %v1018_v3, %v669_v41  ;;  %v1021_v7 = vadd.f32 %v1269_v43, %v1020_v5  ;;  %v1362_v8 = vpop.f32.mrb[7].mxu0 }
 0x472   : > { %v1025_v9 = vadd.f32 %v1021_v7, %v670_v58  ;;  %1026 = vadd.xlane.f32.xlu0 %v1024_v6  ;;  %v1032_v10 = vmul.f32 %v1024_v6, %v1024_v6 }
 0x474   : > { %1028 = vadd.xlane.f32.xlu1 %v1025_v9  ;;  %v1033_v11 = vmul.f32 %v1025_v9, %v1025_v9 }
 0x476   : > { %1034 = vadd.xlane.f32.xlu0 %v1032_v10 }
 0x478   : > { %1036 = vadd.xlane.f32.xlu1 %v1033_v11 }
 0x4ff   : > { %v1027_v12 = vpop.xlane.xlu0 %1026 }
 0x500   : > { %v1030_v13 = vmul.f32 0.0078125, %v1027_v12 }
 0x501   : > { %v1029_v14 = vpop.xlane.xlu1 %1028 }
 0x502   : > { %v1031_v15 = vmul.f32 0.0078125, %v1029_v14  ;;  %v1040_v17 = vmul.f32 %v1030_v13, %v1030_v13  ;;  %v1046_v26 = vsub.f32 %v1024_v6, %v1030_v13 }
 0x503   : > { %v1035_v16 = vpop.xlane.xlu0 %1034 }
 0x504   : > { %v1038_v18 = vmul.f32 0.0078125, %v1035_v16  ;;  %v1041_v20 = vmul.f32 %v1031_v15, %v1031_v15  ;;  %v1047_v29 = vsub.f32 %v1025_v9, %v1031_v15 }
 0x505   : > { %v1037_v19 = vpop.xlane.xlu1 %1036 }
 0x506   : > { %v1042_v21 = vsub.f32 %v1038_v18, %v1040_v17  ;;  %v1039_v62 = vmul.f32 0.0078125, %v1037_v19 }
 0x508   : > { %v1044_v0 = vmax.f32 %v1042_v21, 0.0  ;;  %v1043_v22 = vsub.f32 %v1039_v62, %v1041_v20 }
 0x50a   : > { %v1048_v23 = vadd.f32 1e-05, %v1044_v0  ;;  %v1045_v24 = vmax.f32 %v1043_v22, 0.0 }
 0x50c   : > { %1520 = vrsqrt.f32 %v1048_v23  ;;  %v1049_v25 = vadd.f32 1e-05, %v1045_v24 }
 0x50e   : > { %1522 = vrsqrt.f32 %v1049_v25 }
 0x516   : > { %v1521_v27 = vpop.eup %1520 }
 0x517   : > { %v1052_v30 = vmul.f32 %v1521_v27, %v1046_v26 }
 0x518   : > { %v1523_v31 = vpop.eup %1522 }
 0x519   : > { %v1058_v33 = vmul.f32 %v1278_v28, %v1052_v30  ;;  %v1053_v34 = vmul.f32 %v1523_v31, %v1047_v29 }
 0x51b   : > { %v1064_v35 = vadd.f32 %v1279_v32, %v1058_v33  ;;  %v1059_v36 = vmul.f32 %v1278_v28, %v1053_v34 }
 0x51d   : > { %v1065_v37 = vadd.f32 %v1279_v32, %v1059_v36  ;;  %1066 = vst [vmem:[%s382_s30] sm:$0xff] %v1064_v35 }
 0x51f   : > { %1067 = vst [vmem:[%s382_s30 + $0x8] sm:$0xff] %v1065_v37 }
 0x520   : > { %1681 = shalt.err (!%p1678_p3)
}
 0x521   : > { %s1682_s22 = scalar_lea.hbm %s2149_s17, 256  ;;  %s1686_s16 = scalar_lea.hbm %s2202_s7, 512 }
 0x522   : > { %p1683_p9 = scmp.ne.s32.totalorder %s2149_s17, %s1682_s22  ;;  %p1687_p7 = scmp.lt.u32.totalorder %s2149_s17, %s2202_s7 }
 0x523   : > { %p1688_p12 = scmp.lt.u32.totalorder %s1686_s16, %s1682_s22  ;;  %p1690_p2 = scmp.lt.u32.totalorder %s1682_s22, %s2149_s17 }
 0x524   : > { %p1684_p13 = pnand %p1683_p9, %p1959_p5 }
 0x525   : > { %p1689_p1 = por %p1688_p12, %p1687_p7 }
 0x526   : > { %p1685_p11 = pneg %p1684_p13 }
 0x527   : > { %p1691_p4 = por %p1690_p2, %p1689_p1 }
 0x529   : > { %p1692_p0 = pnand %p1691_p4, %p1685_p11 }
 0x52b   : > { %1695 = shalt.err (!%p1692_p0)
}
 0x52c   : > { %s1760_s23 = smov 128   ;;  %s1761_s14 = smov 8  }
 0x52d   : > { %1379 = dma.vmem_to_hbm [thread:$0]  (%p1959_p5), %s2151_s15, 256, %s2149_s17, %s1069_s21, %s1760_s23, %s1760_s23, %s1761_s14  }
 0x52e PF: > { %s1097_s30 = sand.u32 1, %s1734_s26   ;;  %p2226_p8 = scmp.ne.s32.totalorder %s2210_s9, 0 }
 0x52f   : > { %p2227_p6 = scmp.ge.s32.totalorder %s1746_s29, 2  ;;  %s1098_s25 = scalar_lea.sflag [#allocation5], %s1097_s30 }
 0x531   : > { %p1399_p10 = pnand %p2227_p6, %p2226_p8 }
 0x533   : > { %1729 = dma.done.wait (!%p1399_p10), %s1098_s25, 256  }
 0x534   : > { %1731 = vsyncadd (!%p1399_p10), %s1098_s25, 4294967040  ;;  %p25_p3 = scmp.ge.s32.totalorder %s1945_s13, 4   ;;  %s2228_s26 = smov %s1738_s27 }
 0x535   : > { %s2229_s27 = smov %s1742_s28  ;;  %s2230_s28 = smov %s1955_s19 }
 0x536   : > { %s2231_s29 = smov %s1945_s13  ;;  %27 = sbr.rel (!%p25_p3) target bundleno = 13 (0xd), region = 118 }
 0x53d   :  { %1103 = vsyncpa [#allocation4], 1 }
 0x53e   :  { %1105 = vsyncpa [#allocation4 + $0x1], 1 }
 0x53f   :  { %1106 = vsyncpa [#allocation7], 1 }
 0x540   :  { %1108 = vsyncpa [#allocation7 + $0x1], 1 }
 0x541   :  { %1109 = vsyncpa [#allocation10], 1 }
 0x542   :  { %1110 = vsyncpa [#allocation5], 1 }
 0x543   :  { %1112 = vsyncpa [#allocation5 + $0x1], 1 }

// kernel: tpu_custom_call.1
= control target key start
LH: loop header
LB: loop body
LE: loop exit
PB: predicated region body
PF: predicated region fallthrough
CT: control target
= control target key end

     0   :  { %s2195_s0 = inlined_call_operand.hbm [shape: bf16[32,256], index: 0, kind: input, shape index: {}]   ;;  %s2196_s1 = inlined_call_operand.hbm [shape: bf16[32,256], index: 1, kind: input, shape index: {}]   ;;  %s2197_s2 = inlined_call_operand.hbm [shape: bf16[256,128], index: 2, kind: input, shape index: {}]   ;;  %s2198_s3 = inlined_call_operand.hbm [shape: bf16[256,128], index: 3, kind: input, shape index: {}]   ;;  %s2199_s4 = inlined_call_operand.hbm [shape: bf16[128,128], index: 4, kind: input, shape index: {}]   ;;  %s2200_s5 = inlined_call_operand.vmem [shape: f32[16,128], index: 5, kind: input, shape index: {}]   ;;  %s2201_s6 = inlined_call_operand.<no memory space> [shape: f32[1,1], index: 6, kind: input, shape index: {}]   ;;  %s2202_s7 = inlined_call_operand.hbm [shape: f32[32,128], index: 7, kind: output, shape index: {}]  }
   0x1   :  { %2206 = sst [smem:[#allocation18_spill]] %s2195_s0 }
   0x2   :  { %2207 = sst [smem:[#allocation19_spill]] %s2197_s2 }
   0x3   :  { %2208 = sst [smem:[#allocation20_spill]] %s2198_s3 }
   0x4   :  { %12 = sst [smem:[#allocation2]] %s2201_s6 }
   0x5   :  { %13 = vsyncpa [#allocation4], 0 }
   0x6   :  { %15 = vsyncpa [#allocation4 + $0x1], 0 }
   0x7   :  { %16 = vsyncpa [#allocation7], 0 }
   0x8   :  { %18 = vsyncpa [#allocation7 + $0x1], 0 }
   0x9   :  { %19 = vsyncpa [#allocation10], 0 }
   0xa   :  { %20 = vsyncpa [#allocation5], 0 }
   0xb   :  { %22 = vsyncpa [#allocation5 + $0x1], 0  ;;  %s1805_s26 = smov 0   ;;  %s1807_s27 = smov 0  }
   0xc   :  { %s1809_s28 = smov 0   ;;  %s1811_s29 = smov 0  }
   0xd LB: > { %s1826_s6 = sadd.s32 4294967295, %s1746_s29   ;;  %s1206_s30 = sadd.s32 4294967294, %s1746_s29   ;;  %s1746_s29 = sphi %s1811_s29, %s2231_s29   ;;  %s1742_s28 = sphi %s1809_s28, %s2230_s28   ;;  %s1738_s27 = sphi %s1807_s27, %s2229_s27   ;;  %s1734_s26 = sphi %s1805_s26, %s2228_s26  }
   0xe   : > { %p48_p0 = scmp.ne.s32.totalorder %s1738_s27, %s1734_s26  ;;  %p2203_p1 = scmp.eq.s32.totalorder %s1826_s6, 0 }
   0xf   : > { %p209_p3 = scmp.eq.s32.totalorder %s1206_s30, 1  ;;  %p1207_p5 = scmp.ge.s32.totalorder %s1746_s29, 1 }
  0x10   : > { %p1835_p4 = por %p2203_p1, %p48_p0  ;;  %p216_p7 = scmp.lt.s32.totalorder %s1746_s29, 3 }
  0x11   : > { %p1840_p6 = por %p209_p3, %p48_p0  ;;  %s1748_s11 = smov [#allocation8]  }
  0x12   : > { %s2209_s8 = scalar_select %p1835_p4, 1, 0 }
  0x13   : > { %s2210_s9 = scalar_select %p1840_p6, 1, 0 }
  0x14   : > { %p1845_p8 = pnand %p1207_p5, %p216_p7  ;;  %s228_s12 = sshll.u32 %s1748_s11, 4  ;;  %s1849_s12 = int_to_ptr.vmem [resolvable:$true] %s228_s12 }
  0x15   : > { %s1749_s14 = smov [#allocation9]   ;;  %s1750_s16 = smov [#allocation11]  }
  0x16   : > { %s2211_s10 = scalar_select %p1845_p8, 1, 0 }
  0x17   : > { %p1381_p9 = pneg %p1845_p8  ;;  %s241_s15 = sshll.u32 %s1749_s14, 4  ;;  %s1860_s15 = int_to_ptr.vmem [resolvable:$true] %s241_s15 }
  0x18   : > { %s1862_s17 = sshll.u32 %s1750_s16, 4  ;;  %s2213_s2 = sld [smem:[#allocation19_spill]]  ;;  %s255_s17 = int_to_ptr.vmem [resolvable:$true] %s1862_s17 }
  0x19   : > { %p1856_p11 = pnand %p1381_p9, %p2203_p1 }
  0x1b   : > { %p1872_p13 = pneg %p1856_p11 }
  0x1e   : > { %s1524_s20 = scalar_lea.hbm %s2213_s2, 2048 }
  0x1f   : > { %p1525_p12 = scmp.ne.s32.totalorder %s2213_s2, %s1524_s20  ;;  %p1531_p5 = scmp.lt.u32.totalorder %s1524_s20, %s2213_s2 }
  0x21   : > { %p1527_p0 = pnand %p1872_p13, %p1525_p12 }
  0x23   : > { %p1528_p3 = pneg %p1527_p0 }
  0x25   : > { %p1533_p7 = pnand %p1531_p5, %p1528_p3 }
  0x27   : > { %1536 = shalt.err (!%p1533_p7)
}
  0x28   : > { %s1537_s30 = scalar_lea.vmem %s1849_s12, 2048  ;;  %p1545_p2 = scmp.lt.s32.totalorder %s1849_s12, %s1849_s12 }
  0x29   : > { %p1538_p9 = scmp.ne.s32.totalorder %s1849_s12, %s1537_s30  ;;  %p1546_p6 = scmp.lt.s32.totalorder %s1537_s30, %s1537_s30 }
  0x2b   : > { %p1540_p10 = pnand %p1538_p9, %p1872_p13  ;;  %p1547_p12 = por %p1546_p6, %p1545_p2 }
  0x2d   : > { %p1541_p1 = pneg %p1540_p10 }
  0x2f   : > { %p1548_p0 = pnand %p1547_p12, %p1541_p1 }
  0x31   : > { %1551 = shalt.err (!%p1548_p0)
}
  0x32   : > { %s1751_s11 = smov 64   ;;  %s1752_s14 = smov 4  }
  0x33   : > { %1384 = dma.hbm_to_vmem [thread:$0]  (!%p1856_p11), %s2213_s2, 2048, %s1849_s12, [#allocation7], %s1751_s11, %s1751_s11, %s1752_s14  }
  0x34   : > { %s2215_s3 = sld [smem:[#allocation20_spill]] }
  0x3a   : > { %s1552_s21 = scalar_lea.hbm %s2215_s3, 2048 }
  0x3b   : > { %p1553_p1 = scmp.ne.s32.totalorder %s2215_s3, %s1552_s21  ;;  %p1559_p10 = scmp.lt.u32.totalorder %s1552_s21, %s2215_s3 }
  0x3d   : > { %p1555_p2 = pnand %p1553_p1, %p1872_p13 }
  0x3f   : > { %p1556_p6 = pneg %p1555_p2 }
  0x41   : > { %p1561_p3 = pnand %p1559_p10, %p1556_p6 }
  0x43   : > { %1564 = shalt.err (!%p1561_p3)
}
  0x44   : > { %s1565_s12 = scalar_lea.vmem %s1860_s15, 2048  ;;  %p1573_p12 = scmp.lt.s32.totalorder %s1860_s15, %s1860_s15 }
  0x45   : > { %p1566_p5 = scmp.ne.s32.totalorder %s1860_s15, %s1565_s12  ;;  %p1574_p0 = scmp.lt.s32.totalorder %s1565_s12, %s1565_s12 }
  0x47   : > { %p1568_p7 = pnand %p1566_p5, %p1872_p13  ;;  %p1575_p1 = por %p1574_p0, %p1573_p12 }
  0x49   : > { %p1569_p9 = pneg %p1568_p7 }
  0x4b   : > { %p1576_p2 = pnand %p1575_p1, %p1569_p9 }
  0x4d   : > { %1579 = shalt.err (!%p1576_p2)
}
  0x4e   : > { %1387 = dma.hbm_to_vmem [thread:$0]  (!%p1856_p11), %s2215_s3, 2048, %s1860_s15, [#allocation10], %s1751_s11, %s1751_s11, %s1752_s14  }
  0x4f   : > { %s1580_s21 = scalar_lea.hbm %s2199_s4, 1024 }
  0x50   : > { %p1581_p6 = scmp.ne.s32.totalorder %s2199_s4, %s1580_s21  ;;  %p1587_p5 = scmp.lt.u32.totalorder %s1580_s21, %s2199_s4 }
  0x52   : > { %p1583_p10 = pnand %p1581_p6, %p1872_p13 }
  0x54   : > { %p1584_p3 = pneg %p1583_p10 }
  0x56   : > { %p1589_p7 = pnand %p1587_p5, %p1584_p3 }
  0x58   : > { %1592 = shalt.err (!%p1589_p7)
}
  0x59   : > { %s1593_s12 = scalar_lea.vmem %s255_s17, 1024  ;;  %p1601_p1 = scmp.lt.s32.totalorder %s255_s17, %s255_s17 }
  0x5a   : > { %p1594_p9 = scmp.ne.s32.totalorder %s255_s17, %s1593_s12  ;;  %p1602_p2 = scmp.lt.s32.totalorder %s1593_s12, %s1593_s12 }
  0x5c   : > { %p1596_p12 = pnand %p1594_p9, %p1872_p13  ;;  %p1603_p4 = por %p1602_p2, %p1601_p1 }
  0x5e   : > { %p1597_p0 = pneg %p1596_p12 }
  0x60   : > { %p1604_p8 = pnand %p1603_p4, %p1597_p0 }
  0x62   : > { %1607 = shalt.err (!%p1604_p8)
}
  0x63   : > { %1390 = dma.hbm_to_vmem [thread:$0]  (!%p1856_p11), %s2199_s4, 1024, %s255_s17, [#allocation10], %s1751_s11, %s1751_s11, %s1752_s14  }
  0x64   : > { %s1945_s13 = sadd.s32 1, %s1746_s29   ;;  %s35_s18 = sadd.s32 1, %s1742_s28 }
  0x65   : > { %s32_s23 = ssub.s32 %s1746_s29, %s1945_s13  ;;  %p42_p8 = scmp.ne.s32.totalorder %s1742_s28, %s1738_s27 }
  0x66   : > { %p33_p4 = scmp.eq.s32.totalorder %s32_s23, 0  ;;  %p43_p13 = scmp.eq.s32.totalorder %s1746_s29, 0 }
  0x67   : > { %p1405_p6 = scmp.lt.s32.totalorder %s1746_s29, 2  ;;  %p2216_p3 = scmp.eq.s32.totalorder %s1826_s6, 1 }
  0x68   : > { %s1955_s19 = scalar_select %p33_p4, %s1742_s28, %s35_s18  }
  0x69   : > { %p44_p10 = por %p43_p13, %p42_p8  ;;  %p1959_p5 = por %p2216_p3, %p42_p8 }
  0x6a   : > { %s274_s21 = sand.u32 1, %s1742_s28   ;;  %s1286_s22 = sshll.u32 %s1746_s29, 8 }
  0x6b   : > { %s1965_s17 = sshll.u32 %s274_s21, 4  ;;  %s2218_s0 = sld [smem:[#allocation18_spill]] }
  0x6c   : > { %s278_s25 = scalar_lea.vmem [#allocation3], %s1965_s17  ;;  %p1975_p11 = pnand %p1405_p6, %p44_p10 }
  0x6d   : > { %s286_s30 = sshll.u32 %s278_s25, 4  ;;  %s1981_s15 = scalar_lea.sflag [#allocation4], %s274_s21  ;;  %s1979_s30 = int_to_ptr.vmem [resolvable:$true] %s286_s30 }
  0x6e   : > { %p1610_p9 = pneg %p1975_p11 }
  0x71   : > { %s1972_s24 = scalar_lea.hbm %s2218_s0, %s1286_s22  ;;  %s1613_s11 = scalar_lea.hbm %s2218_s0, 512 }
  0x72   : > { %s1608_s16 = scalar_lea.hbm %s1972_s24, 256  ;;  %p1614_p1 = scmp.lt.u32.totalorder %s1972_s24, %s2218_s0 }
  0x73   : > { %p1609_p7 = scmp.ne.s32.totalorder %s1972_s24, %s1608_s16  ;;  %p1615_p2 = scmp.lt.u32.totalorder %s1613_s11, %s1608_s16 }
  0x74   : > { %p1617_p8 = scmp.lt.u32.totalorder %s1608_s16, %s1972_s24 }
  0x75   : > { %p1611_p12 = pnand %p1610_p9, %p1609_p7  ;;  %p1616_p4 = por %p1615_p2, %p1614_p1 }
  0x77   : > { %p1612_p0 = pneg %p1611_p12  ;;  %p1618_p13 = por %p1617_p8, %p1616_p4 }
  0x79   : > { %p1619_p6 = pnand %p1618_p13, %p1612_p0 }
  0x7b   : > { %1622 = shalt.err (!%p1619_p6)
}
  0x7c   : > { %s1623_s21 = scalar_lea.vmem %s1979_s30, 256  ;;  %s1753_s23 = smov [#allocation3]  }
  0x7d   : > { %p1624_p10 = scmp.ne.s32.totalorder %s1979_s30, %s1623_s21  ;;  %s1628_s18 = sshll.u32 %s1753_s23, 4  ;;  %s1629_s18 = int_to_ptr.vmem [resolvable:$false] %s1628_s18 }
  0x7e   : > { %s1630_s14 = scalar_lea.vmem %s1629_s18, 512  ;;  %p1631_p12 = scmp.lt.s32.totalorder %s1979_s30, %s1629_s18 }
  0x7f   : > { %p1626_p3 = pnand %p1624_p10, %p1610_p9  ;;  %p1632_p1 = scmp.lt.s32.totalorder %s1630_s14, %s1623_s21 }
  0x81   : > { %p1627_p7 = pneg %p1626_p3  ;;  %p1633_p2 = por %p1632_p1, %p1631_p12 }
  0x83   : > { %p1634_p4 = pnand %p1633_p2, %p1627_p7 }
  0x85   : > { %1637 = shalt.err (!%p1634_p4)
}
  0x86   : > { %s1754_s16 = smov 128   ;;  %s1755_s11 = smov 8  }
  0x87   : > { %1394 = dma.hbm_to_vmem [thread:$0]  (!%p1975_p11), %s1972_s24, 256, %s1979_s30, %s1981_s15, %s1754_s16, %s1754_s16, %s1755_s11  }
  0x88   : > { %s2017_s23 = scalar_lea.hbm %s2196_s1, %s1286_s22  ;;  %s300_s18 = scalar_lea.vmem [#allocation6], %s1965_s17 }
  0x89   : > { %s308_s14 = sshll.u32 %s300_s18, 4  ;;  %s296_s0 = sand.u32 1, %s1746_s29   ;;  %s2021_s14 = int_to_ptr.vmem [resolvable:$true] %s308_s14 }
  0x8a   : > { %s2023_s2 = scalar_lea.sflag [#allocation7], %s296_s0  ;;  %s1638_s3 = scalar_lea.hbm %s2017_s23, 256 }
  0x8b   : > { %p1639_p0 = scmp.ne.s32.totalorder %s2017_s23, %s1638_s3  ;;  %s1643_s30 = scalar_lea.hbm %s2196_s1, 512 }
  0x8c   : > { %p1644_p6 = scmp.lt.u32.totalorder %s2017_s23, %s2196_s1  ;;  %p1645_p10 = scmp.lt.u32.totalorder %s1643_s30, %s1638_s3 }
  0x8d   : > { %p1641_p8 = pnand %p1639_p0, %p1610_p9  ;;  %p1647_p7 = scmp.lt.u32.totalorder %s1638_s3, %s2017_s23 }
  0x8e   : > { %p1646_p3 = por %p1645_p10, %p1644_p6 }
  0x8f   : > { %p1642_p13 = pneg %p1641_p8 }
  0x90   : > { %p1648_p12 = por %p1647_p7, %p1646_p3 }
  0x92   : > { %p1649_p1 = pnand %p1648_p12, %p1642_p13 }
  0x94   : > { %1652 = shalt.err (!%p1649_p1)
}
  0x95   : > { %s1653_s0 = scalar_lea.vmem %s2021_s14, 256  ;;  %s1756_s17 = smov [#allocation6]  }
  0x96   : > { %p1654_p2 = scmp.ne.s32.totalorder %s2021_s14, %s1653_s0  ;;  %s1658_s21 = sshll.u32 %s1756_s17, 4  ;;  %s1659_s21 = int_to_ptr.vmem [resolvable:$false] %s1658_s21 }
  0x97   : > { %s1660_s18 = scalar_lea.vmem %s1659_s21, 512  ;;  %p1661_p8 = scmp.lt.s32.totalorder %s2021_s14, %s1659_s21 }
  0x98   : > { %p1656_p4 = pnand %p1654_p2, %p1610_p9  ;;  %p1662_p6 = scmp.lt.s32.totalorder %s1660_s18, %s1653_s0 }
  0x9a   : > { %p1657_p0 = pneg %p1656_p4  ;;  %p1663_p10 = por %p1662_p6, %p1661_p8 }
  0x9c   : > { %p1664_p3 = pnand %p1663_p10, %p1657_p0 }
  0x9e   : > { %1667 = shalt.err (!%p1664_p3)
}
  0x9f   : > { %1397 = dma.hbm_to_vmem [thread:$0]  (!%p1975_p11), %s2017_s23, 256, %s2021_s14, %s2023_s2, %s1754_s16, %s1754_s16, %s1755_s11  }
  0xa0   : > { %p2220_p9 = scmp.ne.s32.totalorder %s2211_s10, 0 }
  0xa1   : > { %s2055_s3 = sand.u32 (!%p2220_p9), 1, %s1738_s27   ;;  %p2221_p13 = scmp.ne.s32.totalorder (!%p2220_p9), %s2209_s8, 0 }
  0xa2   : > { %320 = sbr.rel (%p2220_p9) target bundleno = 1326 (0x52e), region = 48  ;;  %s2058_s24 = sshll.u32 (!%p2220_p9), %s2055_s3, 4 }
  0xa3   : > { %s323_s12 = scalar_lea.sflag (!%p2220_p9), [#allocation4], %s2055_s3  ;;  %s326_s22 = scalar_lea.vmem (!%p2220_p9), [#allocation3], %s2058_s24 }
  0xa9   : > { %1713 = dma.done.wait (%p2221_p13), %s323_s12, 256  }
  0xaa   : > { %1715 = vsyncadd (%p2221_p13), %s323_s12, 4294967040  ;;  %s331_s2 = sand.u32 1, %s1826_s6   ;;  %s335_s16 = scalar_lea.vmem [#allocation6], %s2058_s24 }
  0xab   : > { %s332_s10 = scalar_lea.sflag [#allocation7], %s331_s2 }
  0xac   : > { %1717 = dma.done.wait (%p2221_p13), %s332_s10, 256  }
  0xad   : > { %1719 = vsyncadd (%p2221_p13), %s332_s10, 4294967040  ;;  %p2222_p11 = scmp.eq.s32.totalorder %s1826_s6, 0 }
  0xaf   : > { %1721 = dma.done.wait (%p2222_p11), [#allocation7], 2048   ;;  %p2223_p7 = pmov %p2222_p11 }
  0xb1   : > { %1723 = vsyncadd (%p2223_p7), [#allocation7], 4294965248  ;;  %p2224_p12 = pmov %p2223_p7 }
  0xb2   : > { %p2225_p1 = pmov %p2223_p7 }
  0xb3   : > { %1725 = dma.done.wait (%p2224_p12), [#allocation10], 3072  }
  0xb4   : > { %1727 = vsyncadd (%p2225_p1), [#allocation10], 4294964224  ;;  %v387_v0 = vld [vmem:[%s326_s22] sm:$0xff]  ;;  %v2080_v1 = vld [vmem:[%s326_s22 + $0x8] sm:$0xff]  ;;  %vm1758_vm0 = vmmov 0   ;;  %s894_s17 = sld [smem:[#allocation2]] }
  0xb5   : > { %v389_v2 = vunpack.c.l.bf16 %v387_v0  ;;  %v390_v3 = vunpack.c.h.bf16 %v387_v0  ;;  %v391_v4 = vunpack.c.l.bf16 %v2080_v1  ;;  %v392_v5 = vunpack.c.h.bf16 %v2080_v1  ;;  %v1453_v6 = vld [vmem:[#allocation9 + $0x40] sm:$0xff]   ;;  %v1455_v9 = vld [vmem:[#allocation9 + $0x48] sm:$0xff]   ;;  %v1457_v12 = vld [vmem:[#allocation9 + $0x50] sm:$0xff]   ;;  %s1289_s14 = sshll.u32 %s1826_s6, 8  ;;  %s382_s30 = scalar_lea.vmem [#allocation12], %s2058_s24 }
  0xb6   : > { %v1454_v7 = vld [vmem:[#allocation9] sm:$0xff]   ;;  %1312 = vmatprep.subr.bf16.mxu1 %v1453_v6  ;;  %v1456_v10 = vld [vmem:[#allocation9 + $0x8] sm:$0xff]   ;;  %v1458_v13 = vld [vmem:[#allocation9 + $0x10] sm:$0xff]   ;;  %s1082_s15 = sshll.u32 %s382_s30, 4  ;;  %s1069_s21 = scalar_lea.sflag [#allocation5], %s2055_s3  ;;  %s2151_s15 = int_to_ptr.vmem [resolvable:$true] %s1082_s15 }
  0xb7   : > { %v404_v8 = vadd.f32 %v390_v3, %v389_v2  ;;  %1313 = vmatpush3.bf16.msra.mxu1 %v1454_v7  ;;  %v407_v11 = vadd.f32 %v392_v5, %v391_v4  ;;  %v1459_v14 = vld [vmem:[#allocation9 + $0x58] sm:$0xff]   ;;  %v1461_v16 = vld [vmem:[#allocation9 + $0x60] sm:$0xff]   ;;  %v1463_v18 = vld [vmem:[#allocation9 + $0x68] sm:$0xff]   ;;  %s1668_s18 = scalar_lea.vmem %s2151_s15, 256  ;;  %s1759_s6 = smov [#allocation12]  }
  0xb8   : > { %1314 = vmatprep.subr.bf16.mxu1 %v1455_v9  ;;  %v1460_v15 = vld [vmem:[#allocation9 + $0x18] sm:$0xff]   ;;  %v1462_v17 = vld [vmem:[#allocation9 + $0x20] sm:$0xff]   ;;  %v1464_v19 = vld [vmem:[#allocation9 + $0x28] sm:$0xff]   ;;  %p1669_p2 = scmp.ne.s32.totalorder %s2151_s15, %s1668_s18  ;;  %s1672_s24 = sshll.u32 %s1759_s6, 4  ;;  %s1673_s24 = int_to_ptr.vmem [resolvable:$false] %s1672_s24 }
  0xb9   : > { %405 = vadd.xlane.f32.xlu0 %v404_v8  ;;  %v1465_v20 = vld [vmem:[#allocation9 + $0x70] sm:$0xff]   ;;  %v1467_v23 = vld [vmem:[#allocation9 + $0x78] sm:$0xff]   ;;  %v1472_v26 = vld [vmem:[#allocation8 + $0x40] sm:$0xff]   ;;  %s1674_s12 = scalar_lea.vmem %s1673_s24, 512  ;;  %p1675_p8 = scmp.lt.s32.totalorder %s2151_s15, %s1673_s24 }
  0xba   : > { %v1471_v21 = vld [vmem:[%s335_s16 + $0x4] ss:$8 sps:$4 sm:$0xff]   ;;  %v1469_v25 = vld [vmem:[%s335_s16] ss:$8 sps:$4 sm:$0xff]   ;;  %1290 = vmatprep.subr.bf16.mxu0 %v1472_v26  ;;  %p1670_p4 = pnand %p1669_p2, %p1959_p5  ;;  %p1676_p6 = scmp.lt.s32.totalorder %s1674_s12, %s1668_s18 }
  0xbb   : > { %1315 = vmatpush3.bf16.msra.mxu1 %v1456_v10  ;;  %v1466_v22 = vld [vmem:[#allocation9 + $0x30] sm:$0xff]   ;;  %845 = vmatprep.mubr.bf16.mxu1 %v1471_v21  ;;  %v1468_v24 = vld [vmem:[#allocation9 + $0x38] sm:$0xff]   ;;  %v1473_v27 = vld [vmem:[#allocation8] sm:$0xff]  }
  0xbc   : > { %1316 = vmatprep.subr.bf16.mxu1 %v1457_v12  ;;  %v1474_v28 = vld [vmem:[#allocation8 + $0x48] sm:$0xff]   ;;  %1291 = vmatpush3.bf16.msra.mxu0 %v1473_v27  ;;  %v1476_v44 = vld [vmem:[#allocation8 + $0x50] sm:$0xff]   ;;  %v1478_v46 = vld [vmem:[#allocation8 + $0x58] sm:$0xff]   ;;  %p1671_p0 = pneg %p1670_p4  ;;  %p1677_p10 = por %p1676_p6, %p1675_p8 }
  0xbd   : > { %408 = vadd.xlane.f32.xlu0 %v407_v11  ;;  %v1475_v29 = vld [vmem:[#allocation8 + $0x8] sm:$0xff]   ;;  %1292 = vmatprep.subr.bf16.mxu0 %v1474_v28  ;;  %v1477_v45 = vld [vmem:[#allocation8 + $0x10] sm:$0xff]   ;;  %v1479_v47 = vld [vmem:[#allocation8 + $0x18] sm:$0xff]  }
  0xbe   : > { %v1480_v48 = vld [vmem:[#allocation8 + $0x60] sm:$0xff]   ;;  %v1482_v50 = vld [vmem:[#allocation8 + $0x68] sm:$0xff]   ;;  %v1484_v52 = vld [vmem:[#allocation8 + $0x70] sm:$0xff]   ;;  %p1678_p3 = pnand %p1677_p10, %p1671_p0 }
  0xbf   : > { %1317 = vmatpush3.bf16.msra.mxu1 %v1458_v13  ;;  %v1481_v49 = vld [vmem:[#allocation8 + $0x20] sm:$0xff]   ;;  %v1483_v51 = vld [vmem:[#allocation8 + $0x28] sm:$0xff]   ;;  %v1485_v53 = vld [vmem:[#allocation8 + $0x30] sm:$0xff]  }
  0xc0   : > { %1318 = vmatprep.subr.bf16.mxu1 %v1459_v14  ;;  %1293 = vmatpush3.bf16.msra.mxu0 %v1475_v29  ;;  %v1486_v54 = vld [vmem:[#allocation8 + $0x78] sm:$0xff]   ;;  %v1246_v57 = vld [vmem:[%s2200_s5 + $0x3] ss:$0 sm:$0xff] }
  0xc1   : > { %1294 = vmatprep.subr.bf16.mxu0 %v1476_v44  ;;  %v1487_v55 = vld [vmem:[#allocation8 + $0x38] sm:$0xff]  }
  0xc3   : > { %1319 = vmatpush3.bf16.msra.mxu1 %v1460_v15 }
  0xc4   : > { %1320 = vmatprep.subr.bf16.mxu1 %v1461_v16  ;;  %1295 = vmatpush3.bf16.msra.mxu0 %v1477_v45 }
  0xc5   : > { %1296 = vmatprep.subr.bf16.mxu0 %v1478_v46  ;;  %v1488_v46 = vld [vmem:[#allocation11] sm:$0xff]  }
  0xc7   : > { %1321 = vmatpush3.bf16.msra.mxu1 %v1462_v17 }
  0xc8   : > { %1322 = vmatprep.subr.bf16.mxu1 %v1463_v18  ;;  %1297 = vmatpush3.bf16.msra.mxu0 %v1479_v47  ;;  %v1227_v18 = vld [vmem:[%s2200_s5] ss:$0 sm:$0xff]  ;;  %v1757_v47 = vmov 0.0  }
  0xc9   : > { %1298 = vmatprep.subr.bf16.mxu0 %v1480_v48  ;;  %v1489_v48 = vld [vmem:[#allocation11 + $0x8] sm:$0xff]  }
  0xcb   : > { %1323 = vmatpush3.bf16.msra.mxu1 %v1464_v19 }
  0xcc   : > { %1324 = vmatprep.subr.bf16.mxu1 %v1465_v20  ;;  %1299 = vmatpush3.bf16.msra.mxu0 %v1481_v49  ;;  %v1490_v49 = vld [vmem:[#allocation11 + $0x10] sm:$0xff]  }
  0xcd   : > { %1300 = vmatprep.subr.bf16.mxu0 %v1482_v50  ;;  %v1491_v50 = vld [vmem:[#allocation11 + $0x18] sm:$0xff]  }
  0xcf   : > { %1325 = vmatpush3.bf16.msra.mxu1 %v1466_v22 }
  0xd0   : > { %1326 = vmatprep.subr.bf16.mxu1 %v1467_v23  ;;  %1301 = vmatpush3.bf16.msra.mxu0 %v1483_v51  ;;  %v1492_v51 = vld [vmem:[#allocation11 + $0x20] sm:$0xff]  }
  0xd1   : > { %1302 = vmatprep.subr.bf16.mxu0 %v1484_v52  ;;  %v1493_v52 = vld [vmem:[#allocation11 + $0x28] sm:$0xff]  }
  0xd3   : > { %1327 = vmatpush3.bf16.msra.mxu1 %v1468_v24 }
  0xd4   : > { %1303 = vmatpush3.bf16.msra.mxu0 %v1485_v53  ;;  %v1494_v53 = vld [vmem:[#allocation11 + $0x30] sm:$0xff]  }
  0xd5   : > { %1304 = vmatprep.subr.bf16.mxu0 %v1486_v54  ;;  %v1495_v54 = vld [vmem:[#allocation11 + $0x38] sm:$0xff]  }
  0xd6   : > { %846 = vmatmul.mubr.bf16.vlgmr.msra.gmra.mrb[0].mxu1 %v1469_v25 }
  0xd8   : > { %1305 = vmatpush3.bf16.msra.mxu0 %v1487_v55 }
  0xd9   : > { %1343 = vmatprep.subr.bf16.mxu0 %v1757_v47 }
 0x146   : > { %v406_v30 = vpop.xlane.xlu0 %405 }
 0x147   : > { %v411_v31 = vmul.f32 0.00390625, %v406_v30 }
 0x149   : > { %v2088_v32 = vsub.f32 %v389_v2, %v411_v31  ;;  %v414_v33 = vsub.f32 %v390_v3, %v411_v31 }
 0x14a   : > { %v409_v34 = vpop.xlane.xlu0 %408 }
 0x14b   : > { %v412_v35 = vmul.f32 0.00390625, %v409_v34  ;;  %v417_v36 = vmul.f32 %v2088_v32, %v2088_v32  ;;  %v418_v37 = vmul.f32 %v414_v33, %v414_v33 }
 0x14d   : > { %v415_v38 = vsub.f32 %v391_v4, %v412_v35  ;;  %v416_v39 = vsub.f32 %v392_v5, %v412_v35  ;;  %v421_v40 = vadd.f32 %v418_v37, %v417_v36 }
 0x14f   : > { %422 = vadd.xlane.f32.xlu1 %v421_v40  ;;  %v419_v41 = vmul.f32 %v415_v38, %v415_v38  ;;  %v420_v42 = vmul.f32 %v416_v39, %v416_v39 }
 0x151   : > { %v424_v43 = vadd.f32 %v420_v42, %v419_v41 }
 0x153   : > { %425 = vadd.xlane.f32.xlu1 %v424_v43 }
 0x1a9   : > { %v1328_v56 = vpop.f32.mrb[0].mxu1 }
 0x1aa   : > { %v1329_v58 = vpop.f32.mrb[1].mxu1 }
 0x1ab   : > { %v1330_v59 = vadd.f32 %v1329_v58, %v1328_v56  ;;  %v1331_v60 = vpop.f32.mrb[2].mxu1 }
 0x1ac   : > { %v1332_v61 = vpop.f32.mrb[3].mxu1 }
 0x1ad   : > { %v2095_v62 = vadd.f32 %v1330_v59, %v1246_v57  ;;  %v1333_v63 = vadd.f32 %v1332_v61, %v1331_v60 }
 0x1af   : > { %v2097_v0 = vadd.f32 %v1333_v63, %v1246_v57  ;;  %854 = vadd.xlane.f32.xlu0 %v2095_v62  ;;  %v860_v1 = vmul.f32 %v2095_v62, %v2095_v62 }
 0x1b1   : > { %856 = vadd.xlane.f32.xlu1 %v2097_v0  ;;  %v861_v2 = vmul.f32 %v2097_v0, %v2097_v0 }
 0x1b3   : > { %862 = vadd.xlane.f32.xlu0 %v860_v1 }
 0x1b5   : > { %864 = vadd.xlane.f32.xlu1 %v861_v2 }
 0x1dc   : > { %v423_v3 = vpop.xlane.xlu1 %422 }
 0x1dd   : > { %v427_v4 = vmul.f32 0.00390625, %v423_v3 }
 0x1df   : > { %v429_v5 = vadd.f32 1e-05, %v427_v4 }
 0x1e0   : > { %v426_v6 = vpop.xlane.xlu1 %425 }
 0x1e1   : > { %v428_v7 = vmul.f32 0.00390625, %v426_v6  ;;  %1496 = vrsqrt.f32 %v429_v5 }
 0x1e3   : > { %v430_v8 = vadd.f32 1e-05, %v428_v7 }
 0x1e5   : > { %1498 = vrsqrt.f32 %v430_v8 }
 0x1eb   : > { %v1497_v9 = vpop.eup %1496 }
 0x1ec   : > { %v434_v11 = vmul.f32 %v1497_v9, %v414_v33  ;;  %v433_v13 = vmul.f32 %v1497_v9, %v2088_v32 }
 0x1ef   : > { %v1499_v10 = vpop.eup %1498 }
 0x1f0   : > { %v436_v12 = vmul.f32 %v1499_v10, %v416_v39  ;;  %v435_v14 = vmul.f32 %v1499_v10, %v415_v38 }
 0x1f2   : > { %v438_v15 = vpack.c.bf16 %v436_v12, %v434_v11  ;;  %v437_v16 = vpack.c.bf16 %v435_v14, %v433_v13  ;;  %v1265_v14 = vld [vmem:[%s2200_s5 + $0x4] ss:$0 sm:$0xff] }
 0x1f4   : > { %603 = vmatprep.mubr.bf16.mxu0 %v438_v15 }
 0x1f5   : > { %604 = vmatmul.mubr.bf16.vlgmr.msra.gmra.mrb[0].mxu0 %v437_v16 }
 0x1f6   : > { %1344 = vmatpush3.bf16.msra.mxu0 %v1488_v46  ;;  %1359 = vmatprep.mubr.msk.bf16.mxu0 %vm1758_vm0, %v1757_v47 }
 0x1f7   : > { %1345 = vmatprep.subr.bf16.mxu0 %v1757_v47 }
 0x1fa   : > { %1346 = vmatpush3.bf16.msra.mxu0 %v1489_v48  ;;  %v907_v48 = vstv %s894_s17  ;;  %s2149_s17 = scalar_lea.hbm %s2202_s7, %s1289_s14 }
 0x1fb   : > { %1347 = vmatprep.subr.bf16.mxu0 %v1757_v47 }
 0x1fe   : > { %1348 = vmatpush3.bf16.msra.mxu0 %v1490_v49 }
 0x1ff   : > { %1349 = vmatprep.subr.bf16.mxu0 %v1757_v47 }
 0x202   : > { %1350 = vmatpush3.bf16.msra.mxu0 %v1491_v50 }
 0x203   : > { %1351 = vmatprep.subr.bf16.mxu0 %v1757_v47 }
 0x206   : > { %1352 = vmatpush3.bf16.msra.mxu0 %v1492_v51 }
 0x207   : > { %1353 = vmatprep.subr.bf16.mxu0 %v1757_v47 }
 0x20a   : > { %1354 = vmatpush3.bf16.msra.mxu0 %v1493_v52  ;;  %v1245_v52 = vld [vmem:[%s2200_s5 + $0x2] ss:$0 sm:$0xff] }
 0x20b   : > { %1355 = vmatprep.subr.bf16.mxu0 %v1757_v47 }
 0x20e   : > { %1356 = vmatpush3.bf16.msra.mxu0 %v1494_v53 }
 0x20f   : > { %1357 = vmatprep.subr.bf16.mxu0 %v1757_v47  ;;  %v1244_v47 = vld [vmem:[%s2200_s5 + $0x1] ss:$0 sm:$0xff] }
 0x212   : > { %1358 = vmatpush3.bf16.msra.mxu0 %v1495_v54 }
 0x23c   : > { %v855_v55 = vpop.xlane.xlu0 %854 }
 0x23d   : > { %v858_v57 = vmul.f32 0.0078125, %v855_v55 }
 0x23e   : > { %v857_v56 = vpop.xlane.xlu1 %856 }
 0x23f   : > { %v859_v58 = vmul.f32 0.0078125, %v857_v56  ;;  %v868_v61 = vmul.f32 %v858_v57, %v858_v57  ;;  %v874_v9 = vsub.f32 %v2095_v62, %v858_v57 }
 0x240   : > { %v863_v59 = vpop.xlane.xlu0 %862 }
 0x241   : > { %v866_v63 = vmul.f32 0.0078125, %v863_v59  ;;  %v869_v1 = vmul.f32 %v859_v58, %v859_v58  ;;  %v875_v11 = vsub.f32 %v2097_v0, %v859_v58 }
 0x242   : > { %v865_v60 = vpop.xlane.xlu1 %864 }
 0x243   : > { %v867_v2 = vmul.f32 0.0078125, %v865_v60  ;;  %v870_v3 = vsub.f32 %v866_v63, %v868_v61 }
 0x245   : > { %v871_v4 = vsub.f32 %v867_v2, %v869_v1  ;;  %v872_v5 = vmax.f32 %v870_v3, 0.0 }
 0x247   : > { %v873_v6 = vmax.f32 %v871_v4, 0.0  ;;  %v876_v7 = vadd.f32 1e-05, %v872_v5 }
 0x249   : > { %v877_v8 = vadd.f32 1e-05, %v873_v6 }
 0x2c8   : > { %v1306_v17 = vpop.f32.mrb[0].mxu0 }
 0x2c9   : > { %v1307_v19 = vpop.f32.mrb[1].mxu0 }
 0x2ca   : > { %v1308_v20 = vadd.f32 %v1307_v19, %v1306_v17  ;;  %v1309_v21 = vpop.f32.mrb[2].mxu0  ;;  %v1266_v17 = vld [vmem:[%s2200_s5 + $0x5] ss:$0 sm:$0xff] }
 0x2cb   : > { %v1310_v22 = vpop.f32.mrb[3].mxu0 }
 0x2cc   : > { %v606_v23 = vadd.f32 %v1308_v20, %v1227_v18  ;;  %v1311_v24 = vadd.f32 %v1310_v22, %v1309_v21 }
 0x2ce   : > { %v612_v25 = vmul.f32 %v606_v23, %v606_v23  ;;  %v609_v26 = vadd.f32 %v1311_v24, %v1227_v18 }
 0x2d0   : > { %v614_v27 = vmul.f32 %v612_v25, %v606_v23  ;;  %v613_v28 = vmul.f32 %v609_v26, %v609_v26 }
 0x2d2   : > { %v616_v29 = vmul.f32 0.044715, %v614_v27  ;;  %v615_v30 = vmul.f32 %v613_v28, %v609_v26 }
 0x2d4   : > { %v617_v31 = vmul.f32 0.044715, %v615_v30  ;;  %v618_v32 = vadd.f32 %v616_v29, %v606_v23 }
 0x2d6   : > { %v620_v33 = vmul.f32 0.7978846, %v618_v32  ;;  %v619_v34 = vadd.f32 %v617_v31, %v609_v26 }
 0x2d8   : > { %1500 = vtanh.f32 %v620_v33  ;;  %v621_v35 = vmul.f32 0.7978846, %v619_v34 }
 0x2da   : > { %1502 = vtanh.f32 %v621_v35 }
 0x2db   : > { %1504 = vrsqrt.f32 %v876_v7 }
 0x2dc   : > { %1506 = vrsqrt.f32 %v877_v8 }
 0x2e2   : > { %v1501_v36 = vpop.eup %1500 }
 0x2e3   : > { %v624_v37 = vadd.f32 1.0, %v1501_v36 }
 0x2e4   : > { %v1503_v38 = vpop.eup %1502 }
 0x2e5   : > { %v626_v39 = vmul.f32 0.5, %v624_v37  ;;  %v625_v40 = vadd.f32 1.0, %v1503_v38  ;;  %v1505_v10 = vpop.eup %1504 }
 0x2e6   : > { %v1507_v12 = vpop.eup %1506  ;;  %v880_v13 = vmul.f32 %v1505_v10, %v874_v9 }
 0x2e7   : > { %v2109_v41 = vmul.f32 %v626_v39, %v606_v23  ;;  %v627_v42 = vmul.f32 0.5, %v625_v40  ;;  %v881_v15 = vmul.f32 %v1507_v12, %v875_v11 }
 0x2e8   : > { %v886_v16 = vmul.f32 %v1265_v14, %v880_v13 }
 0x2e9   : > { %630 = vadd.xlane.f32.xlu0 %v2109_v41  ;;  %v2112_v43 = vmul.f32 %v627_v42, %v609_v26  ;;  %v637_v44 = vmul.f32 %v2109_v41, %v2109_v41  ;;  %v887_v18 = vmul.f32 %v1265_v14, %v881_v15 }
 0x2ea   : > { %v892_v19 = vadd.f32 %v1266_v17, %v886_v16 }
 0x2eb   : > { %632 = vadd.xlane.f32.xlu1 %v2112_v43  ;;  %v638_v45 = vmul.f32 %v2112_v43, %v2112_v43  ;;  %v893_v20 = vadd.f32 %v1266_v17, %v887_v18 }
 0x2ec   : > { %v1267_v21 = vmul.f32 -1.442695, %v892_v19 }
 0x2ed   : > { %639 = vadd.xlane.f32.xlu0 %v637_v44  ;;  %v1268_v62 = vmul.f32 -1.442695, %v893_v20 }
 0x2ee   : > { %1508 = vpow2.f32 %v1267_v21 }
 0x2ef   : > { %641 = vadd.xlane.f32.xlu1 %v638_v45  ;;  %1510 = vpow2.f32 %v1268_v62 }
 0x2f8   : > { %v1509_v25 = vpop.eup %1508 }
 0x2f9   : > { %v1511_v27 = vpop.eup %1510  ;;  %v901_v31 = vadd.f32 1.0, %v1509_v25 }
 0x2fa   : > { %v902_v35 = vadd.f32 1.0, %v1511_v27 }
 0x2fb   : > { %1512 = vrcp.f32 %v901_v31 }
 0x2fc   : > { %1514 = vrcp.f32 %v902_v35 }
 0x305   : > { %v1513_v42 = vpop.eup %1512 }
 0x306   : > { %v1515_v44 = vpop.eup %1514  ;;  %v908_v55 = vmul.f32 %v1513_v42, %v907_v48 }
 0x307   : > { %v909_v56 = vmul.f32 %v1515_v44, %v907_v48 }
 0x308   : > { %v910_v59 = vadd.f32 1.0, %v908_v55 }
 0x309   : > { %v911_v60 = vadd.f32 1.0, %v909_v56 }
 0x376   : > { %v631_v0 = vpop.xlane.xlu0 %630 }
 0x377   : > { %v635_v22 = vmul.f32 0.0078125, %v631_v0 }
 0x378   : > { %v633_v23 = vpop.xlane.xlu1 %632 }
 0x379   : > { %v636_v24 = vmul.f32 0.0078125, %v633_v23  ;;  %v645_v28 = vmul.f32 %v635_v22, %v635_v22  ;;  %v651_v45 = vsub.f32 %v2109_v41, %v635_v22 }
 0x37a   : > { %v640_v26 = vpop.xlane.xlu0 %639 }
 0x37b   : > { %v643_v29 = vmul.f32 0.0078125, %v640_v26  ;;  %v646_v32 = vmul.f32 %v636_v24, %v636_v24  ;;  %v652_v49 = vsub.f32 %v2112_v43, %v636_v24  ;;  %v1269_v43 = vld [vmem:[%s2200_s5 + $0x6] ss:$0 sm:$0xff] }
 0x37c   : > { %v642_v30 = vpop.xlane.xlu1 %641 }
 0x37d   : > { %v647_v33 = vsub.f32 %v643_v29, %v645_v28  ;;  %v644_v34 = vmul.f32 0.0078125, %v642_v30  ;;  %v1278_v28 = vld [vmem:[%s2200_s5 + $0x7] ss:$0 sm:$0xff] }
 0x37f   : > { %v649_v36 = vmax.f32 %v647_v33, 0.0  ;;  %v648_v37 = vsub.f32 %v644_v34, %v646_v32  ;;  %v1279_v32 = vld [vmem:[%s2200_s5 + $0x8] ss:$0 sm:$0xff] }
 0x381   : > { %v653_v38 = vadd.f32 1e-05, %v649_v36  ;;  %v650_v39 = vmax.f32 %v648_v37, 0.0 }
 0x383   : > { %1516 = vrsqrt.f32 %v653_v38  ;;  %v654_v40 = vadd.f32 1e-05, %v650_v39 }
 0x385   : > { %1518 = vrsqrt.f32 %v654_v40 }
 0x38d   : > { %v1517_v46 = vpop.eup %1516 }
 0x38e   : > { %v657_v50 = vmul.f32 %v1517_v46, %v651_v45 }
 0x38f   : > { %v1519_v51 = vpop.eup %1518 }
 0x390   : > { %v658_v53 = vmul.f32 %v1519_v51, %v652_v49  ;;  %v663_v54 = vmul.f32 %v1244_v47, %v657_v50 }
 0x392   : > { %v664_v57 = vmul.f32 %v1244_v47, %v658_v53  ;;  %v669_v41 = vadd.f32 %v1245_v52, %v663_v54 }
 0x394   : > { %v670_v58 = vadd.f32 %v1245_v52, %v664_v57  ;;  %v912_v61 = vmul.f32 %v910_v59, %v669_v41 }
 0x396   : > { %v913_v63 = vmul.f32 %v911_v60, %v670_v58 }
 0x398   : > { %v914_v1 = vpack.c.bf16 %v913_v63, %v912_v61 }
 0x39a   : > { %1360 = vmatmul.mubr.bf16.vlgmr.msra.gmra.mrb[4].mxu0 %v914_v1 }
 0x46d   : > { %v1017_v2 = vpop.f32.mrb[4].mxu0 }
 0x46e   : > { %v1018_v3 = vadd.f32 %v1269_v43, %v1017_v2  ;;  %v1361_v4 = vpop.f32.mrb[5].mxu0 }
 0x46f   : > { %v1020_v5 = vpop.f32.mrb[6].mxu0 }
 0x470   : > { %v1024_v6 = vadd.f32 %v1018_v3, %v669_v41  ;;  %v1021_v7 = vadd.f32 %v1269_v43, %v1020_v5  ;;  %v1362_v8 = vpop.f32.mrb[7].mxu0 }
 0x472   : > { %v1025_v9 = vadd.f32 %v1021_v7, %v670_v58  ;;  %1026 = vadd.xlane.f32.xlu0 %v1024_v6  ;;  %v1032_v10 = vmul.f32 %v1024_v6, %v1024_v6 }
 0x474   : > { %1028 = vadd.xlane.f32.xlu1 %v1025_v9  ;;  %v1033_v11 = vmul.f32 %v1025_v9, %v1025_v9 }
 0x476   : > { %1034 = vadd.xlane.f32.xlu0 %v1032_v10 }
 0x478   : > { %1036 = vadd.xlane.f32.xlu1 %v1033_v11 }
 0x4ff   : > { %v1027_v12 = vpop.xlane.xlu0 %1026 }
 0x500   : > { %v1030_v13 = vmul.f32 0.0078125, %v1027_v12 }
 0x501   : > { %v1029_v14 = vpop.xlane.xlu1 %1028 }
 0x502   : > { %v1031_v15 = vmul.f32 0.0078125, %v1029_v14  ;;  %v1040_v17 = vmul.f32 %v1030_v13, %v1030_v13  ;;  %v1046_v26 = vsub.f32 %v1024_v6, %v1030_v13 }
 0x503   : > { %v1035_v16 = vpop.xlane.xlu0 %1034 }
 0x504   : > { %v1038_v18 = vmul.f32 0.0078125, %v1035_v16  ;;  %v1041_v20 = vmul.f32 %v1031_v15, %v1031_v15  ;;  %v1047_v29 = vsub.f32 %v1025_v9, %v1031_v15 }
 0x505   : > { %v1037_v19 = vpop.xlane.xlu1 %1036 }
 0x506   : > { %v1042_v21 = vsub.f32 %v1038_v18, %v1040_v17  ;;  %v1039_v62 = vmul.f32 0.0078125, %v1037_v19 }
 0x508   : > { %v1044_v0 = vmax.f32 %v1042_v21, 0.0  ;;  %v1043_v22 = vsub.f32 %v1039_v62, %v1041_v20 }
 0x50a   : > { %v1048_v23 = vadd.f32 1e-05, %v1044_v0  ;;  %v1045_v24 = vmax.f32 %v1043_v22, 0.0 }
 0x50c   : > { %1520 = vrsqrt.f32 %v1048_v23  ;;  %v1049_v25 = vadd.f32 1e-05, %v1045_v24 }
 0x50e   : > { %1522 = vrsqrt.f32 %v1049_v25 }
 0x516   : > { %v1521_v27 = vpop.eup %1520 }
 0x517   : > { %v1052_v30 = vmul.f32 %v1521_v27, %v1046_v26 }
 0x518   : > { %v1523_v31 = vpop.eup %1522 }
 0x519   : > { %v1058_v33 = vmul.f32 %v1278_v28, %v1052_v30  ;;  %v1053_v34 = vmul.f32 %v1523_v31, %v1047_v29 }
 0x51b   : > { %v1064_v35 = vadd.f32 %v1279_v32, %v1058_v33  ;;  %v1059_v36 = vmul.f32 %v1278_v28, %v1053_v34 }
 0x51d   : > { %v1065_v37 = vadd.f32 %v1279_v32, %v1059_v36  ;;  %1066 = vst [vmem:[%s382_s30] sm:$0xff] %v1064_v35 }
 0x51f   : > { %1067 = vst [vmem:[%s382_s30 + $0x8] sm:$0xff] %v1065_v37 }
 0x520   : > { %1681 = shalt.err (!%p1678_p3)
}
 0x521   : > { %s1682_s22 = scalar_lea.hbm %s2149_s17, 256  ;;  %s1686_s16 = scalar_lea.hbm %s2202_s7, 512 }
 0x522   : > { %p1683_p9 = scmp.ne.s32.totalorder %s2149_s17, %s1682_s22  ;;  %p1687_p7 = scmp.lt.u32.totalorder %s2149_s17, %s2202_s7 }
 0x523   : > { %p1688_p12 = scmp.lt.u32.totalorder %s1686_s16, %s1682_s22  ;;  %p1690_p2 = scmp.lt.u32.totalorder %s1682_s22, %s2149_s17 }
 0x524   : > { %p1684_p13 = pnand %p1683_p9, %p1959_p5 }
 0x525   : > { %p1689_p1 = por %p1688_p12, %p1687_p7 }
 0x526   : > { %p1685_p11 = pneg %p1684_p13 }
 0x527   : > { %p1691_p4 = por %p1690_p2, %p1689_p1 }
 0x529   : > { %p1692_p0 = pnand %p1691_p4, %p1685_p11 }
 0x52b   : > { %1695 = shalt.err (!%p1692_p0)
}
 0x52c   : > { %s1760_s23 = smov 128   ;;  %s1761_s14 = smov 8  }
 0x52d   : > { %1379 = dma.vmem_to_hbm [thread:$0]  (%p1959_p5), %s2151_s15, 256, %s2149_s17, %s1069_s21, %s1760_s23, %s1760_s23, %s1761_s14  }
 0x52e PF: > { %s1097_s30 = sand.u32 1, %s1734_s26   ;;  %p2226_p8 = scmp.ne.s32.totalorder %s2210_s9, 0 }
 0x52f   : > { %p2227_p6 = scmp.ge.s32.totalorder %s1746_s29, 2  ;;  %s1098_s25 = scalar_lea.sflag [#allocation5], %s1097_s30 }
 0x531   : > { %p1399_p10 = pnand %p2227_p6, %p2226_p8 }
 0x533   : > { %1729 = dma.done.wait (!%p1399_p10), %s1098_s25, 256  }
 0x534   : > { %1731 = vsyncadd (!%p1399_p10), %s1098_s25, 4294967040  ;;  %p25_p3 = scmp.ge.s32.totalorder %s1945_s13, 4   ;;  %s2228_s26 = smov %s1738_s27 }
 0x535   : > { %s2229_s27 = smov %s1742_s28  ;;  %s2230_s28 = smov %s1955_s19 }
 0x536   : > { %s2231_s29 = smov %s1945_s13  ;;  %27 = sbr.rel (!%p25_p3) target bundleno = 13 (0xd), region = 118 }
 0x53d   :  { %1103 = vsyncpa [#allocation4], 1 }
 0x53e   :  { %1105 = vsyncpa [#allocation4 + $0x1], 1 }
 0x53f   :  { %1106 = vsyncpa [#allocation7], 1 }
 0x540   :  { %1108 = vsyncpa [#allocation7 + $0x1], 1 }
 0x541   :  { %1109 = vsyncpa [#allocation10], 1 }
 0x542   :  { %1110 = vsyncpa [#allocation5], 1 }
 0x543   :  { %1112 = vsyncpa [#allocation5 + $0x1], 1 }

</bundles_post_ra>
